<compile_context>
chip_gen: v6e
topology: v6e:2x2x1
jax: 0.10.0
libtpu: 0.0.40
codegen_flags: <defaults>
</compile_context>

<pallas_src>
import functools

import numpy as np
import jax
import jax.numpy as jnp
from jax import lax
from jax.experimental import pallas as pl
from jax.experimental.pallas import tpu as pltpu

EMBED_DIM = 128
NUM_HEADS = 4
HEAD_DIM = EMBED_DIM // NUM_HEADS
EPS_ENT = 1e-8
EPS_LN = 1e-5
NEG_INF = -1e30


def _round_up(n, m):
    return ((n + m - 1) // m) * m


# ----------------------------------------------------------------------------
# Pallas kernel: Bb batch elements per grid step (batch axis is "parallel").
# ----------------------------------------------------------------------------
def _layer_norm(y, w, b):
    mu = jnp.mean(y, axis=-1, keepdims=True)
    var = jnp.mean((y - mu) ** 2, axis=-1, keepdims=True)
    return (y - mu) * lax.rsqrt(var + EPS_LN) * w + b


def mem_layer_kernel(x_ref, kv_ref, mask_ref, wcat_ref, w2_ref, vec_ref,
                     out_ref, ent_ref):
    D = EMBED_DIM
    H = NUM_HEADS
    hd = HEAD_DIM
    Bb, S, _ = x_ref.shape
    KVP = kv_ref.shape[1]
    M = Bb * S

    x = x_ref[...].astype(jnp.float32)                    # (Bb,S,D) queries+resid
    x2d = x.reshape(M, D)
    x_bf = x2d.astype(jnp.bfloat16)
    kv2d = kv_ref[...].reshape(Bb * KVP, D)               # bf16 keys/values source
    mbias = mask_ref[...]                                 # (Bb,1,KVP) 0 / -1e30

    # packed bias / layernorm slab (1, 13*D) f32; all offsets multiples of 128.
    bq = vec_ref[:, 0:D]
    bkv = vec_ref[:, D:3 * D]
    bo = vec_ref[:, 3 * D:4 * D]
    b1 = vec_ref[:, 4 * D:8 * D]
    b2 = vec_ref[:, 8 * D:9 * D]
    ln1w = vec_ref[:, 9 * D:10 * D]
    ln1b = vec_ref[:, 10 * D:11 * D]
    ln2w = vec_ref[:, 11 * D:12 * D]
    ln2b = vec_ref[:, 12 * D:13 * D]

    # Q projection (all Bb*S query rows) and fused K/V projection (all Bb*KVP
    # key rows) -- big-M bf16 matmuls, f32 accumulation.
    q2d = jnp.dot(x_bf, wcat_ref[:, 0:D],
                  preferred_element_type=jnp.float32) + bq          # (M, D)
    kvp = jnp.dot(kv2d, wcat_ref[:, D:3 * D],
                  preferred_element_type=jnp.float32) + bkv         # (Bb*KVP, 2D)

    q3 = q2d.reshape(Bb, S, D)
    kvp3 = kvp.reshape(Bb, KVP, 2 * D)

    scale = 1.0 / (hd ** 0.5)
    aw_sum = None
    attn_acc = None
    for h in range(H):
        lo, hi = h * hd, (h + 1) * hd
        qh = q3[:, :, lo:hi].astype(jnp.bfloat16)                   # (Bb,S,hd)
        kh = kvp3[:, :, lo:hi].astype(jnp.bfloat16)                 # (Bb,KVP,hd)
        vh = kvp3[:, :, D + lo:D + hi].astype(jnp.bfloat16)         # (Bb,KVP,hd)

        # batched scores for all Bb elements at once; mask add pushes padded
        # keys to -1e30 before softmax (f32 throughout).
        s = jnp.einsum('bqe,bke->bqk', qh, kh,
                       preferred_element_type=jnp.float32) * scale + mbias
        s = s - jnp.max(s, axis=-1, keepdims=True)
        e = jnp.exp(s)
        p = e * pl.reciprocal(jnp.sum(e, axis=-1, keepdims=True))   # exact EUP
        aw_sum = p if aw_sum is None else aw_sum + p

        ctx = jnp.einsum('bqk,bke->bqe', p.astype(jnp.bfloat16), vh,
                         preferred_element_type=jnp.float32)        # (Bb,S,hd)
        # per-head rows of the output projection (sublane-tile aligned slice);
        # accumulating avoids a lane-concatenate of the per-head contexts.
        part = jnp.dot(ctx.reshape(M, hd).astype(jnp.bfloat16),
                       wcat_ref[lo:hi, 3 * D:4 * D],
                       preferred_element_type=jnp.float32)          # (M, D)
        attn_acc = part if attn_acc is None else attn_acc + part

    attn2d = attn_acc + bo

    # attention entropy averaged over heads (padded keys have p = 0 -> 0 term).
    aw = aw_sum * (1.0 / H)                                         # (Bb,S,KVP)
    ent = -jnp.sum(aw * jnp.log(aw + EPS_ENT), axis=-1)             # (Bb,S)

    # residual + norm1, FFN (D -> 4D -> D), residual + norm2 (all M rows).
    x2 = _layer_norm(x2d + attn2d, ln1w, ln1b)
    h1 = jnp.maximum(
        jnp.dot(x2.astype(jnp.bfloat16), wcat_ref[:, 4 * D:8 * D],
                preferred_element_type=jnp.float32) + b1, 0.0)
    ffo = jnp.dot(h1.astype(jnp.bfloat16), w2_ref[...],
                  preferred_element_type=jnp.float32) + b2
    out = _layer_norm(x2 + ffo, ln2w, ln2b)

    out_ref[...] = out.reshape(Bb, S, D).astype(out_ref.dtype)
    ent_ref[...] = ent.astype(ent_ref.dtype)


def _choose_batch_block(batch):
    # Bb must divide B and (if Bb < B) be a multiple of 8 so the (Bb, S)
    # entropy block stays tileable; small batches run as one grid step.
    for bb in (32, 16, 8):
        if batch % bb == 0:
            return bb
    return batch


def _pack_params(params):
    """Pack weights for the kernel: one bf16 matmul slab (+w2), one f32 vector slab."""
    wcat = jnp.concatenate(
        [params["wqkv_t"], params["wo_t"], params["w1_t"]], axis=1
    ).astype(jnp.bfloat16)                                          # (D, 8D)
    w2 = params["w2_t"].astype(jnp.bfloat16)                        # (4D, D)
    vec = jnp.concatenate(
        [params["bqkv"], params["bo"], params["b1"], params["b2"],
         params["ln1w"], params["ln1b"], params["ln2w"], params["ln2b"]],
        axis=1).astype(jnp.float32)                                 # (1, 13D)
    return wcat, w2, vec


def _run_layer(wcat, w2, vec, x, kv_bf, mask_bias):
    """x: (B,S,D) f32, kv_bf: (B,KVP,D) bf16, mask_bias: (B,1,KVP) f32."""
    B, S, D = x.shape
    KVP = kv_bf.shape[1]
    Bb = _choose_batch_block(B)

    out, ent = pl.pallas_call(
        mem_layer_kernel,
        out_shape=(jax.ShapeDtypeStruct((B, S, D), x.dtype),
                   jax.ShapeDtypeStruct((B, S), jnp.float32)),
        grid=(B // Bb,),
        in_specs=[pl.BlockSpec((Bb, S, D), lambda g: (g, 0, 0)),
                  pl.BlockSpec((Bb, KVP, D), lambda g: (g, 0, 0)),
                  pl.BlockSpec((Bb, 1, KVP), lambda g: (g, 0, 0)),
                  pl.BlockSpec(wcat.shape, lambda g: (0, 0)),
                  pl.BlockSpec(w2.shape, lambda g: (0, 0)),
                  pl.BlockSpec(vec.shape, lambda g: (0, 0))],
        out_specs=(pl.BlockSpec((Bb, S, D), lambda g: (g, 0, 0)),
                   pl.BlockSpec((Bb, S), lambda g: (g, 0))),
        compiler_params=pltpu.CompilerParams(
            dimension_semantics=("parallel",),
            vmem_limit_bytes=32 * 1024 * 1024),
    )(x, kv_bf, mask_bias, wcat, w2, vec)
    return out, ent


# ----------------------------------------------------------------------------
# On-device memory update (fixed-capacity padded buffers, original pruning rule).
# ----------------------------------------------------------------------------
def _update_memory_device(x_b, ent_b, mem_x_b, mem_e_b, mem_len_b, threshold_factor):
    S, _ = x_b.shape
    CAP = mem_x_b.shape[0]
    L = CAP + S

    cand_x = jnp.concatenate([mem_x_b, x_b], axis=0)            # (L, D)
    cand_e = jnp.concatenate([mem_e_b, ent_b], axis=0)          # (L,)
    pos = jnp.arange(L, dtype=jnp.int32)
    valid = (pos < mem_len_b) | (pos >= CAP)
    total = mem_len_b + S
    # original (concatenation) index of each candidate row
    orig_order = jnp.where(pos >= CAP, mem_len_b + (pos - CAP), pos)

    mean_e = jnp.sum(jnp.where(valid, cand_e, 0.0)) / total.astype(jnp.float32)
    thresh = mean_e * threshold_factor
    keep_thr = valid & (cand_e >= thresh)
    n_thr = jnp.sum(keep_thr.astype(jnp.int32))

    prune = total > CAP
    use_topk = prune & (n_thr > CAP)

    e_valid = jnp.where(valid, cand_e, -jnp.inf)
    desc_rank = jnp.argsort(jnp.argsort(-e_valid)).astype(jnp.int32)  # 0 = largest
    keep_topk = valid & (desc_rank < CAP)

    keep = jnp.where(prune, keep_thr, valid)
    keep = jnp.where(use_topk, keep_topk, keep)
    order = jnp.where(use_topk, desc_rank, orig_order)

    # kept rows first, in their required order (original order, or descending
    # entropy for the topk branch -- matching torch.topk semantics).
    sort_key = jnp.where(keep, order, 2 * L + order)
    perm = jnp.argsort(sort_key)
    sel = perm[:CAP]
    new_len = jnp.sum(keep.astype(jnp.int32))

    row = jnp.arange(CAP)
    rvalid = row < new_len
    new_x = jnp.where(rvalid[:, None], cand_x[sel], 0.0)
    new_e = jnp.where(rvalid, cand_e[sel], 0.0)
    ent_eff = jnp.sum(new_e) / new_len.astype(jnp.float32)
    return new_x, new_e, new_len, ent_eff


@functools.partial(jax.jit, static_argnames=("threshold_factor",))
def memory_transformer_forward(params, x, mem_x, mem_ent, mem_len, *, threshold_factor):
    """Mirrors MemoryTransformerLayer.forward with padded, fixed-shape memory.

    x: (B,S,D); mem_x: (B,CAP,D); mem_ent: (B,CAP); mem_len: (B,) int32.
    Returns out, new_mem_x, new_mem_ent, new_mem_len, ent(B,S), ent_eff(scalar).
    """
    B, S, D = x.shape
    CAP = mem_x.shape[1]
    KVP = _round_up(CAP + S, 128)

    # kv = [memory rows (first mem_len valid) | current x | zero pad to KVP]
    kv = jnp.concatenate([mem_x, x], axis=1)
    kv = jnp.pad(kv, ((0, 0), (0, KVP - (CAP + S)), (0, 0)))
    pos = jnp.arange(KVP)
    valid = (pos[None, :] < mem_len[:, None]) | \
            ((pos[None, :] >= CAP) & (pos[None, :] < CAP + S))
    mask_bias = jnp.where(valid, 0.0, NEG_INF).astype(jnp.float32)[:, None, :]

    wcat, w2, vec = _pack_params(params)
    out, ent = _run_layer(wcat, w2, vec, x, kv.astype(jnp.bfloat16), mask_bias)

    new_x, new_e, new_len, ent_eff = jax.vmap(
        _update_memory_device, in_axes=(0, 0, 0, 0, 0, None))(
        x, ent, mem_x, mem_ent, mem_len, threshold_factor)
    return out, new_x, new_e, new_len, ent, jnp.mean(ent_eff)


def init_memory_state(batch, cap, d=EMBED_DIM):
    return (jnp.zeros((batch, cap, d), jnp.float32),
            jnp.zeros((batch, cap), jnp.float32),
            jnp.zeros((batch,), jnp.int32))


# ----------------------------------------------------------------------------
# Deterministic parameter init (shapes from nn.MultiheadAttention / LayerNorm / FF)
# ----------------------------------------------------------------------------
def init_params(key, d=EMBED_DIM):
    ks = jax.random.split(key, 8)
    s = 0.05
    wqkv = jax.random.normal(ks[0], (3 * d, d), jnp.float32) * s   # in_proj_weight
    bqkv = jax.random.normal(ks[1], (3 * d,), jnp.float32) * 0.01  # in_proj_bias
    wo = jax.random.normal(ks[2], (d, d), jnp.float32) * s         # out_proj.weight
    bo = jax.random.normal(ks[3], (d,), jnp.float32) * 0.01
    w1 = jax.random.normal(ks[4], (4 * d, d), jnp.float32) * s     # ff[0].weight
    b1 = jax.random.normal(ks[5], (4 * d,), jnp.float32) * 0.01
    w2 = jax.random.normal(ks[6], (d, 4 * d), jnp.float32) * s     # ff[2].weight
    b2 = jax.random.normal(ks[7], (d,), jnp.float32) * 0.01
    ones = jnp.ones((1, d), jnp.float32)
    zeros = jnp.zeros((1, d), jnp.float32)
    return {
        "wqkv_t": wqkv.T, "bqkv": bqkv[None],
        "wo_t": wo.T, "bo": bo[None],
        "ln1w": ones, "ln1b": zeros,
        "w1_t": w1.T, "b1": b1[None],
        "w2_t": w2.T, "b2": b2[None],
        "ln2w": ones, "ln2b": zeros,
    }


# ----------------------------------------------------------------------------
# Pure-numpy reference (original semantics) for correctness checks.
# ----------------------------------------------------------------------------
def _ref_layer_np(params, x, kv):
    p = {k: np.asarray(v, dtype=np.float64) for k, v in params.items()}
    D, H, hd = EMBED_DIM, NUM_HEADS, HEAD_DIM
    x = np.asarray(x, np.float64)
    kv = np.asarray(kv, np.float64)
    q = x @ p["wqkv_t"][:, :D] + p["bqkv"][0, :D]
    k = kv @ p["wqkv_t"][:, D:2 * D] + p["bqkv"][0, D:2 * D]
    v = kv @ p["wqkv_t"][:, 2 * D:] + p["bqkv"][0, 2 * D:]
    qh = q.reshape(-1, H, hd).transpose(1, 0, 2)
    kh = k.reshape(-1, H, hd).transpose(1, 0, 2)
    vh = v.reshape(-1, H, hd).transpose(1, 0, 2)
    s = np.einsum("hqd,hkd->hqk", qh, kh) / np.sqrt(hd)
    s = s - s.max(-1, keepdims=True)
    e = np.exp(s)
    pw = e / e.sum(-1, keepdims=True)
    ctx = np.einsum("hqk,hkd->hqd", pw, vh).transpose(1, 0, 2).reshape(-1, D)
    attn_out = ctx @ p["wo_t"] + p["bo"][0]
    aw = pw.mean(0)
    ent = -(aw * np.log(aw + EPS_ENT)).sum(-1)

    def ln(y, w, b):
        mu = y.mean(-1, keepdims=True)
        var = ((y - mu) ** 2).mean(-1, keepdims=True)
        return (y - mu) / np.sqrt(var + EPS_LN) * w[0] + b[0]

    x2 = ln(x + attn_out, p["ln1w"], p["ln1b"])
    ffo = np.maximum(x2 @ p["w1_t"] + p["b1"][0], 0.0) @ p["w2_t"] + p["b2"][0]
    out = ln(x2 + ffo, p["ln2w"], p["ln2b"])
    return out, ent


def _ref_update_np(x_b, ent_cur, mem_x, mem_e, cap, tf):
    if mem_x is None:
        mx, me = np.array(x_b), np.array(ent_cur)
    else:
        mx = np.concatenate([mem_x, x_b], axis=0)
        me = np.concatenate([mem_e, ent_cur], axis=0)
    if mx.shape[0] > cap:
        thresh = me.mean() * tf
        idx = np.nonzero(me >= thresh)[0]
        if idx.size > cap:
            idx = np.argsort(-me, kind="stable")[:cap]   # topk, descending
        mx, me = mx[idx], me[idx]
    return mx, me, float(me.sum() / me.size)


if __name__ == "__main__":
    key = jax.random.PRNGKey(0)
    pkey, xk1, xk2 = jax.random.split(key, 3)

    B, S = 2, 8
    MEM_SIZE_BASE = 12        # small so the pruning path is exercised
    THRESHOLD_FACTOR = 1.0

    params = init_params(pkey)
    mem_x, mem_e, mem_len = init_memory_state(B, MEM_SIZE_BASE)

    # ---- step 1: empty memory (k = v = x) ----
    x1 = jax.random.normal(xk1, (B, S, EMBED_DIM), jnp.float32)
    out1, mem_x, mem_e, mem_len, ent1, eff1 = memory_transformer_forward(
        params, x1, mem_x, mem_e, mem_len, threshold_factor=THRESHOLD_FACTOR)
    out1 = jax.block_until_ready(out1)

    x1_np = np.asarray(x1)
    ent1_np = np.asarray(ent1)
    ref_mems, effs_ref1 = [], []
    for b in range(B):
        ro, re = _ref_layer_np(params, x1_np[b], x1_np[b])
        np.testing.assert_allclose(np.asarray(out1[b]), ro, rtol=5e-2, atol=5e-2)
        np.testing.assert_allclose(ent1_np[b], re, rtol=5e-2, atol=5e-2)
        # reference memory update driven by the kernel's own entropies
        rmx, rme, reff = _ref_update_np(x1_np[b], ent1_np[b], None, None,
                                        MEM_SIZE_BASE, THRESHOLD_FACTOR)
        L = int(mem_len[b])
        assert L == rmx.shape[0] <= MEM_SIZE_BASE
        np.testing.assert_allclose(np.asarray(mem_x[b][:L]), rmx, rtol=1e-5, atol=1e-5)
        np.testing.assert_allclose(np.asarray(mem_e[b][:L]), rme, rtol=1e-4, atol=1e-4)
        ref_mems.append((rmx, rme))
        effs_ref1.append(reff)
    np.testing.assert_allclose(float(eff1), float(np.mean(effs_ref1)),
                               rtol=1e-3, atol=1e-3)

    # ---- step 2: with memory (kv = concat(mem, x)) + on-device pruning ----
    x2 = jax.random.normal(xk2, (B, S, EMBED_DIM), jnp.float32)
    out2, mem_x2, mem_e2, mem_len2, ent2, eff2 = memory_transformer_forward(
        params, x2, mem_x, mem_e, mem_len, threshold_factor=THRESHOLD_FACTOR)
    out2 = jax.block_until_ready(out2)

    x2_np = np.asarray(x2)
    ent2_np = np.asarray(ent2)
    effs_ref2 = []
    for b in range(B):
        rmx, rme = ref_mems[b]
        kv_ref = np.concatenate([rmx, x2_np[b]], axis=0)
        ro, re = _ref_layer_np(params, x2_np[b], kv_ref)
        np.testing.assert_allclose(np.asarray(out2[b]), ro, rtol=5e-2, atol=5e-2)
        np.testing.assert_allclose(ent2_np[b], re, rtol=5e-2, atol=5e-2)
        nmx, nme, neff = _ref_update_np(x2_np[b], ent2_np[b], rmx, rme,
                                        MEM_SIZE_BASE, THRESHOLD_FACTOR)
        L = int(mem_len2[b])
        assert L == nmx.shape[0] <= MEM_SIZE_BASE
        np.testing.assert_allclose(np.asarray(mem_x2[b][:L]), nmx, rtol=1e-5, atol=1e-5)
        np.testing.assert_allclose(np.asarray(mem_e2[b][:L]), nme, rtol=1e-4, atol=1e-4)
        effs_ref2.append(neff)
    np.testing.assert_allclose(float(eff2), float(np.mean(effs_ref2)),
                               rtol=1e-3, atol=1e-3)

    assert out2.shape == (B, S, EMBED_DIM)
    assert np.isfinite(float(eff1)) and np.isfinite(float(eff2))

    print("KERNEL_OK")
</pallas_src>

<mosaic_0001>
module attributes {stable_mosaic.version = 11 : i64} {
  func.func @mem_layer_kernel(%arg0: i32, %arg1: memref<2x8x128xf32, #tpu.memory_space<vmem>>, %arg2: memref<2x128x128xbf16, #tpu.memory_space<vmem>>, %arg3: memref<2x1x128xf32, #tpu.memory_space<vmem>>, %arg4: memref<128x1024xbf16, #tpu.memory_space<vmem>>, %arg5: memref<512x128xbf16, #tpu.memory_space<vmem>>, %arg6: memref<1x1664xf32, #tpu.memory_space<vmem>>, %arg7: memref<2x8x128xf32, #tpu.memory_space<vmem>>, %arg8: memref<2x8xf32, #tpu.memory_space<vmem>>) attributes {dimension_semantics = [#tpu.dimension_semantics<parallel>], iteration_bounds = array<i64: 1>, scalar_prefetch = 0 : i64, scratch_operands = 0 : i64, tpu.core_type = #tpu.core_type<tc>, window_params = [{transform_indices = @transform_0, window_bounds = array<i64: 2, 8, 128>}, {transform_indices = @transform_1, window_bounds = array<i64: 2, 128, 128>}, {transform_indices = @transform_2, window_bounds = array<i64: 2, 1, 128>}, {pipeline_mode = #tpu.pipeline_mode<synchronous>, transform_indices = @transform_3, window_bounds = array<i64: 128, 1024>}, {pipeline_mode = #tpu.pipeline_mode<synchronous>, transform_indices = @transform_4, window_bounds = array<i64: 512, 128>}, {pipeline_mode = #tpu.pipeline_mode<synchronous>, transform_indices = @transform_5, window_bounds = array<i64: 1, 1664>}, {transform_indices = @transform_6, window_bounds = array<i64: 2, 8, 128>}, {transform_indices = @transform_7, window_bounds = array<i64: 2, 8>}]} {
    %c0 = arith.constant 0 : index
    %c0_0 = arith.constant 0 : index
    %c0_1 = arith.constant 0 : index
    %0 = vector.load %arg1[%c0, %c0_0, %c0_1] : memref<2x8x128xf32, #tpu.memory_space<vmem>>, vector<2x8x128xf32>
    %1 = vector.shape_cast %0 : vector<2x8x128xf32> to vector<16x128xf32>
    %2 = arith.truncf %1 : vector<16x128xf32> to vector<16x128xbf16>
    %c0_2 = arith.constant 0 : index
    %c0_3 = arith.constant 0 : index
    %c0_4 = arith.constant 0 : index
    %3 = vector.load %arg2[%c0_2, %c0_3, %c0_4] : memref<2x128x128xbf16, #tpu.memory_space<vmem>>, vector<2x128x128xbf16>
    %4 = vector.shape_cast %3 : vector<2x128x128xbf16> to vector<256x128xbf16>
    %c0_5 = arith.constant 0 : index
    %c0_6 = arith.constant 0 : index
    %c0_7 = arith.constant 0 : index
    %5 = vector.load %arg3[%c0_5, %c0_6, %c0_7] : memref<2x1x128xf32, #tpu.memory_space<vmem>>, vector<2x1x128xf32>
    %c0_8 = arith.constant 0 : index
    %c0_9 = arith.constant 0 : index
    %6 = vector.load %arg6[%c0_8, %c0_9] : memref<1x1664xf32, #tpu.memory_space<vmem>>, vector<1x128xf32>
    %c0_10 = arith.constant 0 : index
    %c128 = arith.constant 128 : index
    %7 = vector.load %arg6[%c0_10, %c128] : memref<1x1664xf32, #tpu.memory_space<vmem>>, vector<1x256xf32>
    %c0_11 = arith.constant 0 : index
    %c384 = arith.constant 384 : index
    %8 = vector.load %arg6[%c0_11, %c384] : memref<1x1664xf32, #tpu.memory_space<vmem>>, vector<1x128xf32>
    %c0_12 = arith.constant 0 : index
    %c512 = arith.constant 512 : index
    %9 = vector.load %arg6[%c0_12, %c512] : memref<1x1664xf32, #tpu.memory_space<vmem>>, vector<1x512xf32>
    %c0_13 = arith.constant 0 : index
    %c1024 = arith.constant 1024 : index
    %10 = vector.load %arg6[%c0_13, %c1024] : memref<1x1664xf32, #tpu.memory_space<vmem>>, vector<1x128xf32>
    %c0_14 = arith.constant 0 : index
    %c1152 = arith.constant 1152 : index
    %11 = vector.load %arg6[%c0_14, %c1152] : memref<1x1664xf32, #tpu.memory_space<vmem>>, vector<1x128xf32>
    %c0_15 = arith.constant 0 : index
    %c1280 = arith.constant 1280 : index
    %12 = vector.load %arg6[%c0_15, %c1280] : memref<1x1664xf32, #tpu.memory_space<vmem>>, vector<1x128xf32>
    %c0_16 = arith.constant 0 : index
    %c1408 = arith.constant 1408 : index
    %13 = vector.load %arg6[%c0_16, %c1408] : memref<1x1664xf32, #tpu.memory_space<vmem>>, vector<1x128xf32>
    %c0_17 = arith.constant 0 : index
    %c1536 = arith.constant 1536 : index
    %14 = vector.load %arg6[%c0_17, %c1536] : memref<1x1664xf32, #tpu.memory_space<vmem>>, vector<1x128xf32>
    %c0_18 = arith.constant 0 : index
    %c0_19 = arith.constant 0 : index
    %15 = vector.load %arg4[%c0_18, %c0_19] : memref<128x1024xbf16, #tpu.memory_space<vmem>>, vector<128x128xbf16>
    %cst = arith.constant dense<0.000000e+00> : vector<16x128xf32>
    %16 = tpu.matmul %2, %15, %cst {dimension_numbers = #tpu.dot_dimension_numbers<[1], [0], [0], [1], [0, 0, 1, 1], [], []>} : vector<16x128xbf16>, vector<128x128xbf16>, vector<16x128xf32> -> vector<16x128xf32>
    %17 = vector.broadcast %6 : vector<1x128xf32> to vector<16x128xf32>
    %18 = arith.addf %16, %17 : vector<16x128xf32>
    %c0_20 = arith.constant 0 : index
    %c128_21 = arith.constant 128 : index
    %19 = vector.load %arg4[%c0_20, %c128_21] : memref<128x1024xbf16, #tpu.memory_space<vmem>>, vector<128x256xbf16>
    %cst_22 = arith.constant dense<0.000000e+00> : vector<256x256xf32>
    %20 = tpu.matmul %4, %19, %cst_22 {dimension_numbers = #tpu.dot_dimension_numbers<[1], [0], [0], [1], [0, 0, 1, 1], [], []>} : vector<256x128xbf16>, vector<128x256xbf16>, vector<256x256xf32> -> vector<256x256xf32>
    %21 = vector.broadcast %7 : vector<1x256xf32> to vector<256x256xf32>
    %22 = arith.addf %20, %21 : vector<256x256xf32>
    %23 = vector.shape_cast %18 : vector<16x128xf32> to vector<2x8x128xf32>
    %24 = vector.shape_cast %22 : vector<256x256xf32> to vector<2x128x256xf32>
    %25 = vector.extract_strided_slice %23 {offsets = [0, 0, 0], sizes = [2, 8, 32], strides = [1, 1, 1]} : vector<2x8x128xf32> to vector<2x8x32xf32>
    %26 = arith.truncf %25 : vector<2x8x32xf32> to vector<2x8x32xbf16>
    %27 = vector.extract_strided_slice %24 {offsets = [0, 0, 0], sizes = [2, 128, 32], strides = [1, 1, 1]} : vector<2x128x256xf32> to vector<2x128x32xf32>
    %28 = arith.truncf %27 : vector<2x128x32xf32> to vector<2x128x32xbf16>
    %29 = vector.extract_strided_slice %24 {offsets = [0, 0, 128], sizes = [2, 128, 32], strides = [1, 1, 1]} : vector<2x128x256xf32> to vector<2x128x32xf32>
    %30 = arith.truncf %29 : vector<2x128x32xf32> to vector<2x128x32xbf16>
    "tpu.trace_start"() <{level = 10 : i32, message = "bqe,bke->bqk"}> : () -> ()
    %cst_23 = arith.constant dense<0.000000e+00> : vector<2x8x128xf32>
    %31 = tpu.matmul %26, %28, %cst_23 {dimension_numbers = #tpu.dot_dimension_numbers<[2], [2], [1], [1], [0, 0, 0, 1, 1, 1], [0], [0]>} : vector<2x8x32xbf16>, vector<2x128x32xbf16>, vector<2x8x128xf32> -> vector<2x8x128xf32>
    "tpu.trace_stop"() : () -> ()
    %cst_24 = arith.constant 0.176776692 : f32
    %32 = vector.broadcast %cst_24 : f32 to vector<2x8x128xf32>
    %33 = arith.mulf %31, %32 : vector<2x8x128xf32>
    %34 = vector.broadcast %5 : vector<2x1x128xf32> to vector<2x8x128xf32>
    %35 = arith.addf %33, %34 : vector<2x8x128xf32>
    %cst_25 = arith.constant dense<0xFF800000> : vector<2x8xf32>
    %36 = vector.multi_reduction <maximumf>, %35, %cst_25 [2] : vector<2x8x128xf32> to vector<2x8xf32>
    %37 = vector.shape_cast %36 : vector<2x8xf32> to vector<2x8x1xf32>
    %38 = vector.broadcast %37 : vector<2x8x1xf32> to vector<2x8x128xf32>
    %39 = arith.subf %35, %38 : vector<2x8x128xf32>
    %40 = math.exp %39 : vector<2x8x128xf32>
    %cst_26 = arith.constant dense<0.000000e+00> : vector<2x8xf32>
    %41 = vector.multi_reduction <add>, %40, %cst_26 [2] : vector<2x8x128xf32> to vector<2x8xf32>
    %42 = vector.shape_cast %41 : vector<2x8xf32> to vector<2x8x1xf32>
    %43 = tpu.reciprocal %42 : vector<2x8x1xf32> -> vector<2x8x1xf32>
    %44 = vector.broadcast %43 : vector<2x8x1xf32> to vector<2x8x128xf32>
    %45 = arith.mulf %40, %44 : vector<2x8x128xf32>
    %46 = arith.truncf %45 : vector<2x8x128xf32> to vector<2x8x128xbf16>
    "tpu.trace_start"() <{level = 10 : i32, message = "bqk,bke->bqe"}> : () -> ()
    %cst_27 = arith.constant dense<0.000000e+00> : vector<2x8x32xf32>
    %47 = tpu.matmul %46, %30, %cst_27 {dimension_numbers = #tpu.dot_dimension_numbers<[2], [1], [1], [2], [0, 0, 0, 1, 1, 2], [0], [0]>} : vector<2x8x128xbf16>, vector<2x128x32xbf16>, vector<2x8x32xf32> -> vector<2x8x32xf32>
    "tpu.trace_stop"() : () -> ()
    %48 = vector.shape_cast %47 : vector<2x8x32xf32> to vector<16x32xf32>
    %49 = arith.truncf %48 : vector<16x32xf32> to vector<16x32xbf16>
    %c0_28 = arith.constant 0 : index
    %c384_29 = arith.constant 384 : index
    %50 = vector.load %arg4[%c0_28, %c384_29] : memref<128x1024xbf16, #tpu.memory_space<vmem>>, vector<32x128xbf16>
    %cst_30 = arith.constant dense<0.000000e+00> : vector<16x128xf32>
    %51 = tpu.matmul %49, %50, %cst_30 {dimension_numbers = #tpu.dot_dimension_numbers<[1], [0], [0], [1], [0, 0, 1, 1], [], []>} : vector<16x32xbf16>, vector<32x128xbf16>, vector<16x128xf32> -> vector<16x128xf32>
    %52 = vector.extract_strided_slice %23 {offsets = [0, 0, 32], sizes = [2, 8, 32], strides = [1, 1, 1]} : vector<2x8x128xf32> to vector<2x8x32xf32>
    %53 = arith.truncf %52 : vector<2x8x32xf32> to vector<2x8x32xbf16>
    %54 = vector.extract_strided_slice %24 {offsets = [0, 0, 32], sizes = [2, 128, 32], strides = [1, 1, 1]} : vector<2x128x256xf32> to vector<2x128x32xf32>
    %55 = arith.truncf %54 : vector<2x128x32xf32> to vector<2x128x32xbf16>
    %56 = vector.extract_strided_slice %24 {offsets = [0, 0, 160], sizes = [2, 128, 32], strides = [1, 1, 1]} : vector<2x128x256xf32> to vector<2x128x32xf32>
    %57 = arith.truncf %56 : vector<2x128x32xf32> to vector<2x128x32xbf16>
    "tpu.trace_start"() <{level = 10 : i32, message = "bqe,bke->bqk"}> : () -> ()
    %cst_31 = arith.constant dense<0.000000e+00> : vector<2x8x128xf32>
    %58 = tpu.matmul %53, %55, %cst_31 {dimension_numbers = #tpu.dot_dimension_numbers<[2], [2], [1], [1], [0, 0, 0, 1, 1, 1], [0], [0]>} : vector<2x8x32xbf16>, vector<2x128x32xbf16>, vector<2x8x128xf32> -> vector<2x8x128xf32>
    "tpu.trace_stop"() : () -> ()
    %cst_32 = arith.constant 0.176776692 : f32
    %59 = vector.broadcast %cst_32 : f32 to vector<2x8x128xf32>
    %60 = arith.mulf %58, %59 : vector<2x8x128xf32>
    %61 = vector.broadcast %5 : vector<2x1x128xf32> to vector<2x8x128xf32>
    %62 = arith.addf %60, %61 : vector<2x8x128xf32>
    %cst_33 = arith.constant dense<0xFF800000> : vector<2x8xf32>
    %63 = vector.multi_reduction <maximumf>, %62, %cst_33 [2] : vector<2x8x128xf32> to vector<2x8xf32>
    %64 = vector.shape_cast %63 : vector<2x8xf32> to vector<2x8x1xf32>
    %65 = vector.broadcast %64 : vector<2x8x1xf32> to vector<2x8x128xf32>
    %66 = arith.subf %62, %65 : vector<2x8x128xf32>
    %67 = math.exp %66 : vector<2x8x128xf32>
    %cst_34 = arith.constant dense<0.000000e+00> : vector<2x8xf32>
    %68 = vector.multi_reduction <add>, %67, %cst_34 [2] : vector<2x8x128xf32> to vector<2x8xf32>
    %69 = vector.shape_cast %68 : vector<2x8xf32> to vector<2x8x1xf32>
    %70 = tpu.reciprocal %69 : vector<2x8x1xf32> -> vector<2x8x1xf32>
    %71 = vector.broadcast %70 : vector<2x8x1xf32> to vector<2x8x128xf32>
    %72 = arith.mulf %67, %71 : vector<2x8x128xf32>
    %73 = arith.addf %45, %72 : vector<2x8x128xf32>
    %74 = arith.truncf %72 : vector<2x8x128xf32> to vector<2x8x128xbf16>
    "tpu.trace_start"() <{level = 10 : i32, message = "bqk,bke->bqe"}> : () -> ()
    %cst_35 = arith.constant dense<0.000000e+00> : vector<2x8x32xf32>
    %75 = tpu.matmul %74, %57, %cst_35 {dimension_numbers = #tpu.dot_dimension_numbers<[2], [1], [1], [2], [0, 0, 0, 1, 1, 2], [0], [0]>} : vector<2x8x128xbf16>, vector<2x128x32xbf16>, vector<2x8x32xf32> -> vector<2x8x32xf32>
    "tpu.trace_stop"() : () -> ()
    %76 = vector.shape_cast %75 : vector<2x8x32xf32> to vector<16x32xf32>
    %77 = arith.truncf %76 : vector<16x32xf32> to vector<16x32xbf16>
    %c32 = arith.constant 32 : index
    %c384_36 = arith.constant 384 : index
    %78 = vector.load %arg4[%c32, %c384_36] : memref<128x1024xbf16, #tpu.memory_space<vmem>>, vector<32x128xbf16>
    %cst_37 = arith.constant dense<0.000000e+00> : vector<16x128xf32>
    %79 = tpu.matmul %77, %78, %cst_37 {dimension_numbers = #tpu.dot_dimension_numbers<[1], [0], [0], [1], [0, 0, 1, 1], [], []>} : vector<16x32xbf16>, vector<32x128xbf16>, vector<16x128xf32> -> vector<16x128xf32>
    %80 = arith.addf %51, %79 : vector<16x128xf32>
    %81 = vector.extract_strided_slice %23 {offsets = [0, 0, 64], sizes = [2, 8, 32], strides = [1, 1, 1]} : vector<2x8x128xf32> to vector<2x8x32xf32>
    %82 = arith.truncf %81 : vector<2x8x32xf32> to vector<2x8x32xbf16>
    %83 = vector.extract_strided_slice %24 {offsets = [0, 0, 64], sizes = [2, 128, 32], strides = [1, 1, 1]} : vector<2x128x256xf32> to vector<2x128x32xf32>
    %84 = arith.truncf %83 : vector<2x128x32xf32> to vector<2x128x32xbf16>
    %85 = vector.extract_strided_slice %24 {offsets = [0, 0, 192], sizes = [2, 128, 32], strides = [1, 1, 1]} : vector<2x128x256xf32> to vector<2x128x32xf32>
    %86 = arith.truncf %85 : vector<2x128x32xf32> to vector<2x128x32xbf16>
    "tpu.trace_start"() <{level = 10 : i32, message = "bqe,bke->bqk"}> : () -> ()
    %cst_38 = arith.constant dense<0.000000e+00> : vector<2x8x128xf32>
    %87 = tpu.matmul %82, %84, %cst_38 {dimension_numbers = #tpu.dot_dimension_numbers<[2], [2], [1], [1], [0, 0, 0, 1, 1, 1], [0], [0]>} : vector<2x8x32xbf16>, vector<2x128x32xbf16>, vector<2x8x128xf32> -> vector<2x8x128xf32>
    "tpu.trace_stop"() : () -> ()
    %cst_39 = arith.constant 0.176776692 : f32
    %88 = vector.broadcast %cst_39 : f32 to vector<2x8x128xf32>
    %89 = arith.mulf %87, %88 : vector<2x8x128xf32>
    %90 = vector.broadcast %5 : vector<2x1x128xf32> to vector<2x8x128xf32>
    %91 = arith.addf %89, %90 : vector<2x8x128xf32>
    %cst_40 = arith.constant dense<0xFF800000> : vector<2x8xf32>
    %92 = vector.multi_reduction <maximumf>, %91, %cst_40 [2] : vector<2x8x128xf32> to vector<2x8xf32>
    %93 = vector.shape_cast %92 : vector<2x8xf32> to vector<2x8x1xf32>
    %94 = vector.broadcast %93 : vector<2x8x1xf32> to vector<2x8x128xf32>
    %95 = arith.subf %91, %94 : vector<2x8x128xf32>
    %96 = math.exp %95 : vector<2x8x128xf32>
    %cst_41 = arith.constant dense<0.000000e+00> : vector<2x8xf32>
    %97 = vector.multi_reduction <add>, %96, %cst_41 [2] : vector<2x8x128xf32> to vector<2x8xf32>
    %98 = vector.shape_cast %97 : vector<2x8xf32> to vector<2x8x1xf32>
    %99 = tpu.reciprocal %98 : vector<2x8x1xf32> -> vector<2x8x1xf32>
    %100 = vector.broadcast %99 : vector<2x8x1xf32> to vector<2x8x128xf32>
    %101 = arith.mulf %96, %100 : vector<2x8x128xf32>
    %102 = arith.addf %73, %101 : vector<2x8x128xf32>
    %103 = arith.truncf %101 : vector<2x8x128xf32> to vector<2x8x128xbf16>
    "tpu.trace_start"() <{level = 10 : i32, message = "bqk,bke->bqe"}> : () -> ()
    %cst_42 = arith.constant dense<0.000000e+00> : vector<2x8x32xf32>
    %104 = tpu.matmul %103, %86, %cst_42 {dimension_numbers = #tpu.dot_dimension_numbers<[2], [1], [1], [2], [0, 0, 0, 1, 1, 2], [0], [0]>} : vector<2x8x128xbf16>, vector<2x128x32xbf16>, vector<2x8x32xf32> -> vector<2x8x32xf32>
    "tpu.trace_stop"() : () -> ()
    %105 = vector.shape_cast %104 : vector<2x8x32xf32> to vector<16x32xf32>
    %106 = arith.truncf %105 : vector<16x32xf32> to vector<16x32xbf16>
    %c64 = arith.constant 64 : index
    %c384_43 = arith.constant 384 : index
    %107 = vector.load %arg4[%c64, %c384_43] : memref<128x1024xbf16, #tpu.memory_space<vmem>>, vector<32x128xbf16>
    %cst_44 = arith.constant dense<0.000000e+00> : vector<16x128xf32>
    %108 = tpu.matmul %106, %107, %cst_44 {dimension_numbers = #tpu.dot_dimension_numbers<[1], [0], [0], [1], [0, 0, 1, 1], [], []>} : vector<16x32xbf16>, vector<32x128xbf16>, vector<16x128xf32> -> vector<16x128xf32>
    %109 = arith.addf %80, %108 : vector<16x128xf32>
    %110 = vector.extract_strided_slice %23 {offsets = [0, 0, 96], sizes = [2, 8, 32], strides = [1, 1, 1]} : vector<2x8x128xf32> to vector<2x8x32xf32>
    %111 = arith.truncf %110 : vector<2x8x32xf32> to vector<2x8x32xbf16>
    %112 = vector.extract_strided_slice %24 {offsets = [0, 0, 96], sizes = [2, 128, 32], strides = [1, 1, 1]} : vector<2x128x256xf32> to vector<2x128x32xf32>
    %113 = arith.truncf %112 : vector<2x128x32xf32> to vector<2x128x32xbf16>
    %114 = vector.extract_strided_slice %24 {offsets = [0, 0, 224], sizes = [2, 128, 32], strides = [1, 1, 1]} : vector<2x128x256xf32> to vector<2x128x32xf32>
    %115 = arith.truncf %114 : vector<2x128x32xf32> to vector<2x128x32xbf16>
    "tpu.trace_start"() <{level = 10 : i32, message = "bqe,bke->bqk"}> : () -> ()
    %cst_45 = arith.constant dense<0.000000e+00> : vector<2x8x128xf32>
    %116 = tpu.matmul %111, %113, %cst_45 {dimension_numbers = #tpu.dot_dimension_numbers<[2], [2], [1], [1], [0, 0, 0, 1, 1, 1], [0], [0]>} : vector<2x8x32xbf16>, vector<2x128x32xbf16>, vector<2x8x128xf32> -> vector<2x8x128xf32>
    "tpu.trace_stop"() : () -> ()
    %cst_46 = arith.constant 0.176776692 : f32
    %117 = vector.broadcast %cst_46 : f32 to vector<2x8x128xf32>
    %118 = arith.mulf %116, %117 : vector<2x8x128xf32>
    %119 = vector.broadcast %5 : vector<2x1x128xf32> to vector<2x8x128xf32>
    %120 = arith.addf %118, %119 : vector<2x8x128xf32>
    %cst_47 = arith.constant dense<0xFF800000> : vector<2x8xf32>
    %121 = vector.multi_reduction <maximumf>, %120, %cst_47 [2] : vector<2x8x128xf32> to vector<2x8xf32>
    %122 = vector.shape_cast %121 : vector<2x8xf32> to vector<2x8x1xf32>
    %123 = vector.broadcast %122 : vector<2x8x1xf32> to vector<2x8x128xf32>
    %124 = arith.subf %120, %123 : vector<2x8x128xf32>
    %125 = math.exp %124 : vector<2x8x128xf32>
    %cst_48 = arith.constant dense<0.000000e+00> : vector<2x8xf32>
    %126 = vector.multi_reduction <add>, %125, %cst_48 [2] : vector<2x8x128xf32> to vector<2x8xf32>
    %127 = vector.shape_cast %126 : vector<2x8xf32> to vector<2x8x1xf32>
    %128 = tpu.reciprocal %127 : vector<2x8x1xf32> -> vector<2x8x1xf32>
    %129 = vector.broadcast %128 : vector<2x8x1xf32> to vector<2x8x128xf32>
    %130 = arith.mulf %125, %129 : vector<2x8x128xf32>
    %131 = arith.addf %102, %130 : vector<2x8x128xf32>
    %132 = arith.truncf %130 : vector<2x8x128xf32> to vector<2x8x128xbf16>
    "tpu.trace_start"() <{level = 10 : i32, message = "bqk,bke->bqe"}> : () -> ()
    %cst_49 = arith.constant dense<0.000000e+00> : vector<2x8x32xf32>
    %133 = tpu.matmul %132, %115, %cst_49 {dimension_numbers = #tpu.dot_dimension_numbers<[2], [1], [1], [2], [0, 0, 0, 1, 1, 2], [0], [0]>} : vector<2x8x128xbf16>, vector<2x128x32xbf16>, vector<2x8x32xf32> -> vector<2x8x32xf32>
    "tpu.trace_stop"() : () -> ()
    %134 = vector.shape_cast %133 : vector<2x8x32xf32> to vector<16x32xf32>
    %135 = arith.truncf %134 : vector<16x32xf32> to vector<16x32xbf16>
    %c96 = arith.constant 96 : index
    %c384_50 = arith.constant 384 : index
    %136 = vector.load %arg4[%c96, %c384_50] : memref<128x1024xbf16, #tpu.memory_space<vmem>>, vector<32x128xbf16>
    %cst_51 = arith.constant dense<0.000000e+00> : vector<16x128xf32>
    %137 = tpu.matmul %135, %136, %cst_51 {dimension_numbers = #tpu.dot_dimension_numbers<[1], [0], [0], [1], [0, 0, 1, 1], [], []>} : vector<16x32xbf16>, vector<32x128xbf16>, vector<16x128xf32> -> vector<16x128xf32>
    %138 = arith.addf %109, %137 : vector<16x128xf32>
    %139 = vector.broadcast %8 : vector<1x128xf32> to vector<16x128xf32>
    %140 = arith.addf %138, %139 : vector<16x128xf32>
    %cst_52 = arith.constant 2.500000e-01 : f32
    %141 = vector.broadcast %cst_52 : f32 to vector<2x8x128xf32>
    %142 = arith.mulf %131, %141 : vector<2x8x128xf32>
    %cst_53 = arith.constant 9.99999993E-9 : f32
    %143 = vector.broadcast %cst_53 : f32 to vector<2x8x128xf32>
    %144 = arith.addf %142, %143 : vector<2x8x128xf32>
    %145 = math.log %144 : vector<2x8x128xf32>
    %146 = arith.mulf %142, %145 : vector<2x8x128xf32>
    %cst_54 = arith.constant dense<0.000000e+00> : vector<2x8xf32>
    %147 = vector.multi_reduction <add>, %146, %cst_54 [2] : vector<2x8x128xf32> to vector<2x8xf32>
    %cst_55 = arith.constant 0.000000e+00 : f32
    %148 = vector.broadcast %cst_55 : f32 to vector<2x8xf32>
    %149 = arith.subf %148, %147 : vector<2x8xf32>
    %150 = arith.addf %1, %140 : vector<16x128xf32>
    %cst_56 = arith.constant dense<0.000000e+00> : vector<16xf32>
    %151 = vector.multi_reduction <add>, %150, %cst_56 [1] : vector<16x128xf32> to vector<16xf32>
    %152 = vector.shape_cast %151 : vector<16xf32> to vector<16x1xf32>
    %cst_57 = arith.constant 1.280000e+02 : f32
    %153 = vector.broadcast %cst_57 : f32 to vector<16x1xf32>
    %154 = arith.divf %152, %153 : vector<16x1xf32>
    %155 = vector.broadcast %154 : vector<16x1xf32> to vector<16x128xf32>
    %156 = arith.subf %150, %155 : vector<16x128xf32>
    %157 = arith.mulf %156, %156 : vector<16x128xf32>
    %cst_58 = arith.constant dense<0.000000e+00> : vector<16xf32>
    %158 = vector.multi_reduction <add>, %157, %cst_58 [1] : vector<16x128xf32> to vector<16xf32>
    %159 = vector.shape_cast %158 : vector<16xf32> to vector<16x1xf32>
    %cst_59 = arith.constant 1.280000e+02 : f32
    %160 = vector.broadcast %cst_59 : f32 to vector<16x1xf32>
    %161 = arith.divf %159, %160 : vector<16x1xf32>
    %162 = vector.broadcast %154 : vector<16x1xf32> to vector<16x128xf32>
    %163 = arith.subf %150, %162 : vector<16x128xf32>
    %cst_60 = arith.constant 9.99999974E-6 : f32
    %164 = vector.broadcast %cst_60 : f32 to vector<16x1xf32>
    %165 = arith.addf %161, %164 : vector<16x1xf32>
    %166 = math.rsqrt %165 : vector<16x1xf32>
    %167 = vector.broadcast %166 : vector<16x1xf32> to vector<16x128xf32>
    %168 = arith.mulf %163, %167 : vector<16x128xf32>
    %169 = vector.broadcast %11 : vector<1x128xf32> to vector<16x128xf32>
    %170 = arith.mulf %168, %169 : vector<16x128xf32>
    %171 = vector.broadcast %12 : vector<1x128xf32> to vector<16x128xf32>
    %172 = arith.addf %170, %171 : vector<16x128xf32>
    %173 = arith.truncf %172 : vector<16x128xf32> to vector<16x128xbf16>
    %c0_61 = arith.constant 0 : index
    %c512_62 = arith.constant 512 : index
    %174 = vector.load %arg4[%c0_61, %c512_62] : memref<128x1024xbf16, #tpu.memory_space<vmem>>, vector<128x512xbf16>
    %cst_63 = arith.constant dense<0.000000e+00> : vector<16x512xf32>
    %175 = tpu.matmul %173, %174, %cst_63 {dimension_numbers = #tpu.dot_dimension_numbers<[1], [0], [0], [1], [0, 0, 1, 1], [], []>} : vector<16x128xbf16>, vector<128x512xbf16>, vector<16x512xf32> -> vector<16x512xf32>
    %176 = vector.broadcast %9 : vector<1x512xf32> to vector<16x512xf32>
    %177 = arith.addf %175, %176 : vector<16x512xf32>
    %cst_64 = arith.constant 0.000000e+00 : f32
    %178 = vector.broadcast %cst_64 : f32 to vector<16x512xf32>
    %179 = arith.maximumf %177, %178 : vector<16x512xf32>
    %180 = arith.truncf %179 : vector<16x512xf32> to vector<16x512xbf16>
    %c0_65 = arith.constant 0 : index
    %c0_66 = arith.constant 0 : index
    %181 = vector.load %arg5[%c0_65, %c0_66] : memref<512x128xbf16, #tpu.memory_space<vmem>>, vector<512x128xbf16>
    %cst_67 = arith.constant dense<0.000000e+00> : vector<16x128xf32>
    %182 = tpu.matmul %180, %181, %cst_67 {dimension_numbers = #tpu.dot_dimension_numbers<[1], [0], [0], [1], [0, 0, 1, 1], [], []>} : vector<16x512xbf16>, vector<512x128xbf16>, vector<16x128xf32> -> vector<16x128xf32>
    %183 = vector.broadcast %10 : vector<1x128xf32> to vector<16x128xf32>
    %184 = arith.addf %182, %183 : vector<16x128xf32>
    %185 = arith.addf %172, %184 : vector<16x128xf32>
    %cst_68 = arith.constant dense<0.000000e+00> : vector<16xf32>
    %186 = vector.multi_reduction <add>, %185, %cst_68 [1] : vector<16x128xf32> to vector<16xf32>
    %187 = vector.shape_cast %186 : vector<16xf32> to vector<16x1xf32>
    %cst_69 = arith.constant 1.280000e+02 : f32
    %188 = vector.broadcast %cst_69 : f32 to vector<16x1xf32>
    %189 = arith.divf %187, %188 : vector<16x1xf32>
    %190 = vector.broadcast %189 : vector<16x1xf32> to vector<16x128xf32>
    %191 = arith.subf %185, %190 : vector<16x128xf32>
    %192 = arith.mulf %191, %191 : vector<16x128xf32>
    %cst_70 = arith.constant dense<0.000000e+00> : vector<16xf32>
    %193 = vector.multi_reduction <add>, %192, %cst_70 [1] : vector<16x128xf32> to vector<16xf32>
    %194 = vector.shape_cast %193 : vector<16xf32> to vector<16x1xf32>
    %cst_71 = arith.constant 1.280000e+02 : f32
    %195 = vector.broadcast %cst_71 : f32 to vector<16x1xf32>
    %196 = arith.divf %194, %195 : vector<16x1xf32>
    %197 = vector.broadcast %189 : vector<16x1xf32> to vector<16x128xf32>
    %198 = arith.subf %185, %197 : vector<16x128xf32>
    %cst_72 = arith.constant 9.99999974E-6 : f32
    %199 = vector.broadcast %cst_72 : f32 to vector<16x1xf32>
    %200 = arith.addf %196, %199 : vector<16x1xf32>
    %201 = math.rsqrt %200 : vector<16x1xf32>
    %202 = vector.broadcast %201 : vector<16x1xf32> to vector<16x128xf32>
    %203 = arith.mulf %198, %202 : vector<16x128xf32>
    %204 = vector.broadcast %13 : vector<1x128xf32> to vector<16x128xf32>
    %205 = arith.mulf %203, %204 : vector<16x128xf32>
    %206 = vector.broadcast %14 : vector<1x128xf32> to vector<16x128xf32>
    %207 = arith.addf %205, %206 : vector<16x128xf32>
    %208 = vector.shape_cast %207 : vector<16x128xf32> to vector<2x8x128xf32>
    %c0_73 = arith.constant 0 : index
    %c0_74 = arith.constant 0 : index
    %c0_75 = arith.constant 0 : index
    %209 = vector.load %arg7[%c0_73, %c0_74, %c0_75] : memref<2x8x128xf32, #tpu.memory_space<vmem>>, vector<2x8x128xf32>
    tpu.vector_store %arg7[%c0_73, %c0_74, %c0_75], %208 {strides = array<i32>} : memref<2x8x128xf32, #tpu.memory_space<vmem>>, vector<2x8x128xf32>,
    %c0_76 = arith.constant 0 : index
    %c0_77 = arith.constant 0 : index
    %210 = vector.load %arg8[%c0_76, %c0_77] : memref<2x8xf32, #tpu.memory_space<vmem>>, vector<2x8xf32>
    tpu.vector_store %arg8[%c0_76, %c0_77], %149 {strides = array<i32>} : memref<2x8xf32, #tpu.memory_space<vmem>>, vector<2x8xf32>,
    return
  }
  func.func @transform_0(%arg0: i32) -> (i32, i32, i32) {
    %c0_i32 = arith.constant 0 : i32
    %c0_i32_0 = arith.constant 0 : i32
    %c0_i32_1 = arith.constant 0 : i32
    return %arg0, %c0_i32, %c0_i32_0 : i32, i32, i32
  }
  func.func @transform_1(%arg0: i32) -> (i32, i32, i32) {
    %c0_i32 = arith.constant 0 : i32
    %c0_i32_0 = arith.constant 0 : i32
    %c0_i32_1 = arith.constant 0 : i32
    return %arg0, %c0_i32, %c0_i32_0 : i32, i32, i32
  }
  func.func @transform_2(%arg0: i32) -> (i32, i32, i32) {
    %c0_i32 = arith.constant 0 : i32
    %c0_i32_0 = arith.constant 0 : i32
    %c0_i32_1 = arith.constant 0 : i32
    return %arg0, %c0_i32, %c0_i32_0 : i32, i32, i32
  }
  func.func @transform_3(%arg0: i32) -> (i32, i32) {
    %c0_i32 = arith.constant 0 : i32
    %c0_i32_0 = arith.constant 0 : i32
    %c0_i32_1 = arith.constant 0 : i32
    return %c0_i32, %c0_i32_0 : i32, i32
  }
  func.func @transform_4(%arg0: i32) -> (i32, i32) {
    %c0_i32 = arith.constant 0 : i32
    %c0_i32_0 = arith.constant 0 : i32
    %c0_i32_1 = arith.constant 0 : i32
    return %c0_i32, %c0_i32_0 : i32, i32
  }
  func.func @transform_5(%arg0: i32) -> (i32, i32) {
    %c0_i32 = arith.constant 0 : i32
    %c0_i32_0 = arith.constant 0 : i32
    %c0_i32_1 = arith.constant 0 : i32
    return %c0_i32, %c0_i32_0 : i32, i32
  }
  func.func @transform_6(%arg0: i32) -> (i32, i32, i32) {
    %c0_i32 = arith.constant 0 : i32
    %c0_i32_0 = arith.constant 0 : i32
    %c0_i32_1 = arith.constant 0 : i32
    return %arg0, %c0_i32, %c0_i32_0 : i32, i32, i32
  }
  func.func @transform_7(%arg0: i32) -> (i32, i32) {
    %c0_i32 = arith.constant 0 : i32
    %c0_i32_0 = arith.constant 0 : i32
    return %arg0, %c0_i32 : i32, i32
  }
}

</mosaic_0001>

<bundles_post_ra>
// kernel: memory_transformer_forward.1
= control target key start
LH: loop header
LB: loop body
LE: loop exit
PB: predicated region body
PF: predicated region fallthrough
CT: control target
= control target key end

     0   :  { %v3760_v6 = vmov 0   ;;  %v3761_v7 = vmov 0.0   ;;  %vm3762_vm0 = vmmov 0   ;;  %s5038_s0 = inlined_call_operand.vmem [shape: f32[2,8,128], index: 0, kind: input, shape index: {}]   ;;  %s5039_s1 = inlined_call_operand.vmem [shape: bf16[2,128,128], index: 1, kind: input, shape index: {}]   ;;  %s5040_s2 = inlined_call_operand.vmem [shape: f32[2,1,128], index: 2, kind: input, shape index: {}]   ;;  %s5041_s3 = inlined_call_operand.vmem [shape: bf16[128,1024], index: 3, kind: input, shape index: {}]   ;;  %s5042_s4 = inlined_call_operand.vmem [shape: bf16[512,128], index: 4, kind: input, shape index: {}]   ;;  %s5043_s5 = inlined_call_operand.vmem [shape: f32[1,1664], index: 5, kind: input, shape index: {}]   ;;  %s5044_s6 = inlined_call_operand.hbm [shape: f32[2,8,128], index: 6, kind: output, shape index: {0}]   ;;  %s5045_s7 = inlined_call_operand.vmem [shape: f32[2,8], index: 7, kind: output, shape index: {1}]  }
   0x1   :  { %v198_v0 = vld [vmem:[%s5041_s3 + $0x1c4] sm:$0xff]  ;;  %419 = vmatprep.mubr.bf16.mxu1 %v3760_v6  ;;  %3261 = vmatprep.subr.bf16.mxu0 %v3761_v7  ;;  %v87_v24 = vld [vmem:[%s5041_s3 + $0x1c0] sm:$0xf]  ;;  %v3644_v62 = vld [vmem:[%s5039_s1 + $0x10] sm:$0xff]  }
   0x2   :  { %v199_v1 = vld [vmem:[%s5041_s3 + $0x1e4] sm:$0xff]  ;;  %v88_v25 = vld [vmem:[%s5041_s3 + $0x1e0] sm:$0xf]  ;;  %3277 = vmatprep.mubr.msk.bf16.mxu0 %vm3762_vm0, %v3761_v7 }
   0x3   :  { %v196_v2 = vld [vmem:[%s5041_s3 + $0x184] sm:$0xff]  ;;  %v2959_v3 = vcombine.high %v198_v0, %v199_v1  ;;  %v2958_v4 = vcombine.low %v198_v0, %v199_v1  ;;  %v2927_v28 = vcombine.low %v87_v24, %v88_v25  ;;  %v85_v30 = vld [vmem:[%s5041_s3 + $0x180] sm:$0xf] }
   0x4   :  { %v197_v5 = vld [vmem:[%s5041_s3 + $0x1a4] sm:$0xff]  ;;  %v86_v31 = vld [vmem:[%s5041_s3 + $0x1a0] sm:$0xf] }
   0x5   :  { %v2957_v8 = vcombine.high %v196_v2, %v197_v5  ;;  %v194_v9 = vld [vmem:[%s5041_s3 + $0x144] sm:$0xff]  ;;  %387 = vmatprep.subr.bf16.mxu1 %v2959_v3  ;;  %v2956_v11 = vcombine.low %v196_v2, %v197_v5  ;;  %3262 = vmatpush3.bf16.msra.mxu0 %v2927_v28  ;;  %v2926_v32 = vcombine.low %v85_v30, %v86_v31  ;;  %v83_v34 = vld [vmem:[%s5041_s3 + $0x140] sm:$0xf] }
   0x6   :  { %v195_v10 = vld [vmem:[%s5041_s3 + $0x164] sm:$0xff]  ;;  %388 = vmatpush1.bf16.msra.mxu1 %v2958_v4  ;;  %3263 = vmatprep.subr.bf16.mxu0 %v3761_v7  ;;  %v84_v35 = vld [vmem:[%s5041_s3 + $0x160] sm:$0xf] }
   0x7   :  { %389 = vmatprep.subr.bf16.mxu1 %v2957_v8  ;;  %v2955_v12 = vcombine.high %v194_v9, %v195_v10  ;;  %v192_v13 = vld [vmem:[%s5041_s3 + $0x104] sm:$0xff]  ;;  %v2954_v15 = vcombine.low %v194_v9, %v195_v10  ;;  %v2925_v39 = vcombine.low %v83_v34, %v84_v35  ;;  %v81_v40 = vld [vmem:[%s5041_s3 + $0x100] sm:$0xf] }
   0x8   :  { %v193_v14 = vld [vmem:[%s5041_s3 + $0x124] sm:$0xff]  ;;  %v82_v42 = vld [vmem:[%s5041_s3 + $0x120] sm:$0xf] }
   0x9   :  { %v2953_v16 = vcombine.high %v192_v13, %v193_v14  ;;  %v190_v17 = vld [vmem:[%s5041_s3 + $0xc4] sm:$0xff]  ;;  %v2952_v19 = vcombine.low %v192_v13, %v193_v14  ;;  %3264 = vmatpush3.bf16.msra.mxu0 %v2926_v32  ;;  %v2924_v44 = vcombine.low %v81_v40, %v82_v42  ;;  %v79_v45 = vld [vmem:[%s5041_s3 + $0xc0] sm:$0xf] }
   0xa   :  { %390 = vmatpush1.bf16.msra.mxu1 %v2956_v11  ;;  %v191_v18 = vld [vmem:[%s5041_s3 + $0xe4] sm:$0xff]  ;;  %3265 = vmatprep.subr.bf16.mxu0 %v3761_v7  ;;  %v80_v46 = vld [vmem:[%s5041_s3 + $0xe0] sm:$0xf] }
   0xb   :  { %391 = vmatprep.subr.bf16.mxu1 %v2955_v12  ;;  %v2951_v20 = vcombine.high %v190_v17, %v191_v18  ;;  %v188_v21 = vld [vmem:[%s5041_s3 + $0x84] sm:$0xff]  ;;  %v2950_v23 = vcombine.low %v190_v17, %v191_v18  ;;  %v77_v49 = vld [vmem:[%s5041_s3 + $0x80] sm:$0xf]  ;;  %v2923_v50 = vcombine.low %v79_v45, %v80_v46 }
   0xc   :  { %v189_v22 = vld [vmem:[%s5041_s3 + $0xa4] sm:$0xff]  ;;  %v78_v51 = vld [vmem:[%s5041_s3 + $0xa0] sm:$0xf] }
   0xd   :  { %v2949_v26 = vcombine.high %v188_v21, %v189_v22  ;;  %v186_v27 = vld [vmem:[%s5041_s3 + $0x44] sm:$0xff]  ;;  %v2948_v33 = vcombine.low %v188_v21, %v189_v22  ;;  %3266 = vmatpush3.bf16.msra.mxu0 %v2925_v39  ;;  %v75_v52 = vld [vmem:[%s5041_s3 + $0x40] sm:$0xf]  ;;  %v2922_v54 = vcombine.low %v77_v49, %v78_v51 }
   0xe   :  { %392 = vmatpush1.bf16.msra.mxu1 %v2954_v15  ;;  %v187_v29 = vld [vmem:[%s5041_s3 + $0x64] sm:$0xff]  ;;  %3267 = vmatprep.subr.bf16.mxu0 %v3761_v7  ;;  %v76_v53 = vld [vmem:[%s5041_s3 + $0x60] sm:$0xf] }
   0xf   :  { %393 = vmatprep.subr.bf16.mxu1 %v2953_v16  ;;  %v2947_v36 = vcombine.high %v186_v27, %v187_v29  ;;  %v184_v37 = vld [vmem:[%s5041_s3 + $0x4] sm:$0xff]  ;;  %v2946_v41 = vcombine.low %v186_v27, %v187_v29  ;;  %v73_v56 = vld [vmem:[%s5041_s3] sm:$0xf]  ;;  %v2921_v58 = vcombine.low %v75_v52, %v76_v53 }
  0x10   :  { %v185_v38 = vld [vmem:[%s5041_s3 + $0x24] sm:$0xff]  ;;  %v74_v57 = vld [vmem:[%s5041_s3 + $0x20] sm:$0xf] }
  0x11   :  { %v2945_v43 = vcombine.high %v184_v37, %v185_v38  ;;  %v2944_v47 = vcombine.low %v184_v37, %v185_v38  ;;  %v3642_v48 = vld [vmem:[%s5039_s1] sm:$0xff]   ;;  %3268 = vmatpush3.bf16.msra.mxu0 %v2924_v44  ;;  %v3643_v55 = vld [vmem:[%s5039_s1 + $0x8] sm:$0xff]   ;;  %v2920_v61 = vcombine.low %v73_v56, %v74_v57 }
  0x12   :  { %394 = vmatpush1.bf16.msra.mxu1 %v2952_v19  ;;  %3269 = vmatprep.subr.bf16.mxu0 %v3761_v7  ;;  %v27_v59 = vld [vmem:[%s5038_s0] sm:$0xff]  ;;  %v28_v60 = vld [vmem:[%s5038_s0 + $0x8] sm:$0xff] }
  0x13   :  { %395 = vmatprep.subr.bf16.mxu1 %v2951_v20  ;;  %v29_v63 = vpack.c.bf16 %v28_v60, %v27_v59 }
  0x15   :  { %3270 = vmatpush3.bf16.msra.mxu0 %v2923_v50 }
  0x16   :  { %396 = vmatpush1.bf16.msra.mxu1 %v2950_v23  ;;  %3271 = vmatprep.subr.bf16.mxu0 %v3761_v7 }
  0x17   :  { %397 = vmatprep.subr.bf16.mxu1 %v2949_v26 }
  0x19   :  { %3272 = vmatpush3.bf16.msra.mxu0 %v2922_v54 }
  0x1a   :  { %398 = vmatpush1.bf16.msra.mxu1 %v2948_v33  ;;  %3273 = vmatprep.subr.bf16.mxu0 %v3761_v7 }
  0x1b   :  { %399 = vmatprep.subr.bf16.mxu1 %v2947_v36 }
  0x1d   :  { %3274 = vmatpush3.bf16.msra.mxu0 %v2921_v58 }
  0x1e   :  { %400 = vmatpush1.bf16.msra.mxu1 %v2946_v41  ;;  %3275 = vmatprep.subr.bf16.mxu0 %v3761_v7 }
  0x1f   :  { %401 = vmatprep.subr.bf16.mxu1 %v2945_v43 }
  0x21   :  { %3276 = vmatpush3.bf16.msra.mxu0 %v2920_v61 }
  0x22   :  { %402 = vmatpush1.bf16.msra.mxu1 %v2944_v47  ;;  %3281 = vmatprep.subr.bf16.mxu0 %v3761_v7 }
  0x23   :  { %3321 = vmatprep.subr.bf16.mxu1 %v3761_v7 }
  0x25   :  { %420 = vmatmul.mubr.bf16.vlgmr.msra.gmra.mxu1 %v3642_v48 }
  0x26   :  { %429 = vmatprep.mubr.bf16.mxu1 %v3760_v6 }
  0x2d   :  { %430 = vmatmul.mubr.bf16.gmra.mxu1 %v3643_v55 }
  0x2e   :  { %439 = vmatprep.mubr.bf16.mxu1 %v3760_v6 }
  0x2f   :  { %13 = vsyncpa [#allocation3], 0  ;;  %3278 = vmatmul.mubr.bf16.vlgmr.msra.gmra.mxu0 %v29_v63  ;;  %v3645_v0 = vld [vmem:[%s5039_s1 + $0x18] sm:$0xff]   ;;  %v3646_v1 = vld [vmem:[%s5039_s1 + $0x20] sm:$0xff]   ;;  %v201_v15 = vlaneseq  ;;  %vm614_vm1 = vcmask 261120   ;;  %s3763_s12 = smov 96  }
  0x30   :  { %3297 = vmatprep.mubr.msk.bf16.mxu0 %vm3762_vm0, %v3761_v7  ;;  %v3647_v2 = vld [vmem:[%s5039_s1 + $0x28] sm:$0xff]   ;;  %v3648_v3 = vld [vmem:[%s5039_s1 + $0x30] sm:$0xff]   ;;  %v3649_v4 = vld [vmem:[%s5039_s1 + $0x38] sm:$0xff]   ;;  %s3764_s17 = smov 64   ;;  %vm2894_vm2 = vcmask 1041409   ;;  %vm2897_vm3 = vcmask 58368  }
  0x31   :  { %v3650_v5 = vld [vmem:[%s5039_s1 + $0x40] sm:$0xff]   ;;  %v3651_v8 = vld [vmem:[%s5039_s1 + $0x48] sm:$0xff]   ;;  %v3652_v9 = vld [vmem:[%s5039_s1 + $0x50] sm:$0xff]   ;;  %v3992_v16 = vshrl.u32 %v201_v15, 7 }
  0x32   :  { %v3653_v10 = vld [vmem:[%s5039_s1 + $0x58] sm:$0xff]   ;;  %v3654_v11 = vld [vmem:[%s5039_s1 + $0x60] sm:$0xff]   ;;  %v3655_v12 = vld [vmem:[%s5039_s1 + $0x68] sm:$0xff]  }
  0x33   :  { %v3656_v13 = vld [vmem:[%s5039_s1 + $0x70] sm:$0xff]   ;;  %v3657_v14 = vld [vmem:[%s5039_s1 + $0x78] sm:$0xff]   ;;  %v203_v17 = vsub.s32 0, %v3992_v16  ;;  %v65_v18 = vld [vmem:[%s5043_s5 + $0x1] sm:$0x3]  ;;  %v207_v28 = vsub.s32 1, %v3992_v16 }
  0x34   :  { %v4028_v41 = vld [vmem:[%s5043_s5] ss:$0 sm:$0xff]  ;;  %s3765_s1 = smov 32  }
  0x35   :  { %440 = vmatmul.mubr.bf16.gmra.mxu1 %v3644_v62  ;;  %v4000_v20 = vrot.slane %v65_v18, %v203_v17  ;;  %v4013_v31 = vrot.slane %v65_v18, %v207_v28 }
  0x36   :  { %449 = vmatprep.mubr.bf16.mxu1 %v3760_v6 }
  0x3d   :  { %450 = vmatmul.mubr.bf16.gmra.mxu1 %v3645_v0 }
  0x3e   :  { %459 = vmatprep.mubr.bf16.mxu1 %v3760_v6 }
  0x45   :  { %460 = vmatmul.mubr.bf16.gmra.mxu1 %v3646_v1 }
  0x46   :  { %469 = vmatprep.mubr.bf16.mxu1 %v3760_v6 }
  0x4d   :  { %470 = vmatmul.mubr.bf16.gmra.mxu1 %v3647_v2 }
  0x4e   :  { %479 = vmatprep.mubr.bf16.mxu1 %v3760_v6 }
  0x55   :  { %480 = vmatmul.mubr.bf16.gmra.mxu1 %v3648_v3 }
  0x56   :  { %489 = vmatprep.mubr.bf16.mxu1 %v3760_v6 }
  0x5d   :  { %490 = vmatmul.mubr.bf16.gmra.mxu1 %v3649_v4 }
  0x5e   :  { %499 = vmatprep.mubr.bf16.mxu1 %v3760_v6 }
  0x65   :  { %500 = vmatmul.mubr.bf16.gmra.mxu1 %v3650_v5 }
  0x66   :  { %509 = vmatprep.mubr.bf16.mxu1 %v3760_v6 }
  0x6d   :  { %510 = vmatmul.mubr.bf16.gmra.mxu1 %v3651_v8 }
  0x6e   :  { %519 = vmatprep.mubr.bf16.mxu1 %v3760_v6 }
  0x75   :  { %520 = vmatmul.mubr.bf16.gmra.mxu1 %v3652_v9 }
  0x76   :  { %529 = vmatprep.mubr.bf16.mxu1 %v3760_v6 }
  0x7d   :  { %530 = vmatmul.mubr.bf16.gmra.mxu1 %v3653_v10 }
  0x7e   :  { %539 = vmatprep.mubr.bf16.mxu1 %v3760_v6 }
  0x85   :  { %540 = vmatmul.mubr.bf16.gmra.mxu1 %v3654_v11 }
  0x86   :  { %549 = vmatprep.mubr.bf16.mxu1 %v3760_v6 }
  0x8d   :  { %550 = vmatmul.mubr.bf16.gmra.mxu1 %v3655_v12 }
  0x8e   :  { %559 = vmatprep.mubr.bf16.mxu1 %v3760_v6 }
  0x95   :  { %560 = vmatmul.mubr.bf16.gmra.mxu1 %v3656_v13 }
  0x96   :  { %569 = vmatprep.mubr.bf16.mxu1 %v3760_v6 }
  0x9d   :  { %570 = vmatmul.mubr.bf16.gmra.mxu1 %v3657_v14 }
  0x9e   :  { %3337 = vmatprep.mubr.msk.bf16.mxu1 %vm3762_vm0, %v3761_v7 }
  0xe5   :  { %v421_v19 = vpop.f32.mrf.mxu1 }
  0xe6   :  { %v422_v23 = vadd.f32 %v421_v19, %v4000_v20 }
  0xe7   :  { %v4002_v21 = vpop.f32.mrf.mxu1 }
  0xe9   :  { %v425_v22 = vpop.f32.mrf.mxu1 }
  0xea   :  { %v426_v24 = vadd.f32 %v425_v22, %v4000_v20 }
  0xeb   :  { %v4006_v25 = vpop.f32.mrf.mxu1 }
  0xec   :  { %v4008_v26 = vpack.c.bf16 %v426_v24, %v422_v23 }
  0xed   :  { %v431_v27 = vpop.f32.mrf.mxu1 }
  0xee   :  { %v432_v32 = vadd.f32 %v431_v27, %v4000_v20 }
  0xef   :  { %v433_v29 = vpop.f32.mrf.mxu1  ;;  %v4021_v38 = vpop.f32.mrf.mxu0 }
  0xf0   :  { %v434_v35 = vadd.f32 %v433_v29, %v4013_v31 }
  0xf1   :  { %v435_v30 = vpop.f32.mrf.mxu1  ;;  %v3279_v42 = vpop.f32.mrf.mxu0 }
  0xf2   :  { %v436_v33 = vadd.f32 %v435_v30, %v4000_v20 }
  0xf3   :  { %v437_v34 = vpop.f32.mrf.mxu1  ;;  %v180_v44 = vpop.f32.mrf.mxu0 }
  0xf4   :  { %v4018_v36 = vpack.c.bf16 %v436_v33, %v432_v32  ;;  %v438_v37 = vadd.f32 %v437_v34, %v4013_v31  ;;  %v4033_v46 = vadd.f32 %v4028_v41, %v180_v44 }
  0xf5   :  { %v441_v39 = vpop.f32.mrf.mxu1  ;;  %v3280_v49 = vpop.f32.mrf.mxu0 }
  0xf6   :  { %v4023_v40 = vpack.c.bf16 %v438_v37, %v434_v35  ;;  %v442_v47 = vadd.f32 %v441_v39, %v4000_v20 }
  0xf7   :  { %v4030_v43 = vpop.f32.mrf.mxu1 }
  0xf9   :  { %v445_v45 = vpop.f32.mrf.mxu1 }
  0xfa   :  { %v446_v48 = vadd.f32 %v445_v45, %v4000_v20 }
  0xfb   :  { %v4037_v50 = vpop.f32.mrf.mxu1 }
  0xfc   :  { %v4039_v51 = vpack.c.bf16 %v446_v48, %v442_v47 }
  0xfd   :  { %v451_v52 = vpop.f32.mrf.mxu1 }
  0xfe   :  { %v452_v55 = vadd.f32 %v451_v52, %v4000_v20 }
  0xff   :  { %v4041_v53 = vpop.f32.mrf.mxu1 }
 0x101   :  { %v455_v54 = vpop.f32.mrf.mxu1 }
 0x102   :  { %v456_v56 = vadd.f32 %v455_v54, %v4000_v20 }
 0x103   :  { %v457_v57 = vpop.f32.mrf.mxu1 }
 0x104   :  { %v4045_v58 = vpack.c.bf16 %v456_v56, %v452_v55 }
 0x105   :  { %v4047_v59 = vpop.f32.mrf.mxu1 }
 0x107   :  { %v463_v60 = vpop.f32.mrf.mxu1 }
 0x109   :  { %v4049_v61 = vpop.f32.mrf.mxu1 }
 0x10b   :  { %v467_v62 = vpop.f32.mrf.mxu1 }
 0x10c   :  { %v468_v55 = vadd.f32 %v467_v62, %v4013_v31  ;;  %v458_v62 = vadd.f32 %v457_v57, %v4013_v31 }
 0x10d   :  { %v471_v63 = vpop.f32.mrf.mxu1 }
 0x10f   :  { %v473_v0 = vpop.f32.mrf.mxu1 }
 0x110   :  { %v474_v48 = vadd.f32 %v473_v0, %v4013_v31 }
 0x111   :  { %v475_v1 = vpop.f32.mrf.mxu1 }
 0x113   :  { %v477_v2 = vpop.f32.mrf.mxu1 }
 0x114   :  { %v478_v35 = vadd.f32 %v477_v2, %v4013_v31  ;;  %v476_v2 = vadd.f32 %v475_v1, %v4000_v20 }
 0x115   :  { %v481_v3 = vpop.f32.mrf.mxu1 }
 0x116   :  { %v482_v33 = vadd.f32 %v481_v3, %v4000_v20  ;;  %v4084_v3 = vpack.c.bf16 %v478_v35, %v474_v48 }
 0x117   :  { %v483_v4 = vpop.f32.mrf.mxu1 }
 0x118   :  { %v484_v34 = vadd.f32 %v483_v4, %v4013_v31 }
 0x119   :  { %v485_v5 = vpop.f32.mrf.mxu1 }
 0x11a   :  { %v486_v24 = vadd.f32 %v485_v5, %v4000_v20 }
 0x11b   :  { %v487_v8 = vpop.f32.mrf.mxu1 }
 0x11c   :  { %v488_v27 = vadd.f32 %v487_v8, %v4013_v31  ;;  %v4069_v39 = vpack.c.bf16 %v486_v24, %v482_v33  ;;  %v464_v8 = vadd.f32 %v463_v60, %v4013_v31  ;;  %v444_v33 = vadd.f32 %v4030_v43, %v4013_v31 }
 0x11d   :  { %v491_v9 = vpop.f32.mrf.mxu1 }
 0x11e   :  { %v492_v12 = vadd.f32 %v491_v9, %v4000_v20  ;;  %v4071_v42 = vpack.c.bf16 %v488_v27, %v484_v34  ;;  %v637_v0 = vsel %vm614_vm1, %v4069_v39, 0  ;;  %v472_v9 = vadd.f32 %v471_v63, %v4000_v20 }
 0x11f   :  { %v493_v10 = vpop.f32.mrf.mxu1  ;;  %v454_v63 = vadd.f32 %v4041_v53, %v4013_v31  ;;  %v466_v27 = vadd.f32 %v4049_v61, %v4000_v20 }
 0x120   :  { %v494_v18 = vadd.f32 %v493_v10, %v4013_v31  ;;  %v4096_v10 = vpack.c.bf16 %v468_v55, %v464_v8 }
 0x121   :  { %v495_v11 = vpop.f32.mrf.mxu1  ;;  %v4112_v24 = vpack.c.bf16 %v458_v62, %v454_v63 }
 0x122   :  { %v496_v13 = vadd.f32 %v495_v11, %v4000_v20  ;;  %v4098_v11 = vpack.c.bf16 %v476_v2, %v472_v9  ;;  %v424_v2 = vadd.f32 %v4002_v21, %v4013_v31 }
 0x123   :  { %v497_v14 = vpop.f32.mrf.mxu1 }
 0x124   :  { %v4054_v19 = vpack.c.bf16 %v496_v13, %v492_v12  ;;  %v498_v22 = vadd.f32 %v497_v14, %v4013_v31 }
 0x125   :  { %v501_v23 = vpop.f32.mrf.mxu1 }
 0x126   :  { %v4059_v29 = vpack.c.bf16 %v498_v22, %v494_v18  ;;  %v640_v30 = vsel %vm614_vm1, %v4054_v19, 0  ;;  %v502_v44 = vadd.f32 %v501_v23, %v4000_v20  ;;  %v448_v22 = vadd.f32 %v4037_v50, %v4013_v31 }
 0x127   :  { %v503_v32 = vpop.f32.mrf.mxu1  ;;  %3282 = vmatpush3.bf16.xpose.msra.mxu0 %v640_v30  ;;  %v634_v30 = vsel %vm614_vm1, %v4098_v11, 0  ;;  %v462_v50 = vadd.f32 %v4047_v59, %v4000_v20 }
 0x128   :  { %3322 = vmatpush3.bf16.msra.mxu1 %v4059_v29  ;;  %3283 = vmatprep.subr.bf16.mxu0 %v3761_v7  ;;  %v504_v49 = vadd.f32 %v503_v32, %v4013_v31  ;;  %v4127_v61 = vpack.c.bf16 %v448_v22, %v444_v33 }
 0x129   :  { %v505_v37 = vpop.f32.mrf.mxu1  ;;  %3323 = vmatprep.subr.bf16.mxu1 %v3761_v7  ;;  %v4129_v35 = vpack.c.bf16 %v466_v27, %v462_v50 }
 0x12a   :  { %v506_v45 = vadd.f32 %v505_v37, %v4000_v20 }
 0x12b   :  { %v507_v47 = vpop.f32.mrf.mxu1  ;;  %v631_v55 = vsel %vm614_vm1, %v4129_v35, 0 }
 0x12c   :  { %v4077_v52 = vpack.c.bf16 %v506_v45, %v502_v44  ;;  %v508_v54 = vadd.f32 %v507_v47, %v4013_v31  ;;  %3324 = vmatpush3.bf16.msra.mxu1 %v4071_v42 }
 0x12d   :  { %v511_v56 = vpop.f32.mrf.mxu1  ;;  %3325 = vmatprep.subr.bf16.mxu1 %v3761_v7 }
 0x12e   :  { %v4086_v4 = vpack.c.bf16 %v508_v54, %v504_v49  ;;  %v512_v12 = vadd.f32 %v511_v56, %v4000_v20  ;;  %v428_v49 = vadd.f32 %v4006_v25, %v4013_v31 }
 0x12f   :  { %v513_v5 = vpop.f32.mrf.mxu1  ;;  %3284 = vmatpush3.bf16.xpose.msra.mxu0 %v637_v0 }
 0x130   :  { %3326 = vmatpush3.bf16.msra.mxu1 %v4084_v3  ;;  %3285 = vmatprep.subr.bf16.mxu0 %v3761_v7  ;;  %v514_v14 = vadd.f32 %v513_v5, %v4013_v31  ;;  %v4150_v5 = vpack.c.bf16 %v428_v49, %v424_v2 }
 0x131   :  { %v515_v1 = vpop.f32.mrf.mxu1  ;;  %3327 = vmatprep.subr.bf16.mxu1 %v3761_v7 }
 0x132   :  { %v516_v13 = vadd.f32 %v515_v1, %v4000_v20 }
 0x133   :  { %v517_v60 = vpop.f32.mrf.mxu1 }
 0x134   :  { %v4105_v18 = vpack.c.bf16 %v516_v13, %v512_v12  ;;  %v518_v57 = vadd.f32 %v517_v60, %v4013_v31  ;;  %3328 = vmatpush3.bf16.msra.mxu1 %v4096_v10  ;;  %v628_v60 = vsel %vm614_vm1, %v4045_v58, 0 }
 0x135   :  { %v521_v23 = vpop.f32.mrf.mxu1  ;;  %3329 = vmatprep.subr.bf16.mxu1 %v3761_v7 }
 0x136   :  { %v4116_v53 = vpack.c.bf16 %v518_v57, %v514_v14  ;;  %v522_v37 = vadd.f32 %v521_v23, %v4000_v20 }
 0x137   :  { %v523_v32 = vpop.f32.mrf.mxu1  ;;  %3286 = vmatpush3.bf16.xpose.msra.mxu0 %v634_v30 }
 0x138   :  { %3330 = vmatpush3.bf16.msra.mxu1 %v4112_v24  ;;  %3287 = vmatprep.subr.bf16.mxu0 %v3761_v7  ;;  %v524_v43 = vadd.f32 %v523_v32, %v4013_v31  ;;  %v625_v32 = vsel %vm614_vm1, %v4039_v51, 0 }
 0x139   :  { %v525_v34 = vpop.f32.mrf.mxu1  ;;  %3331 = vmatprep.subr.bf16.mxu1 %v3761_v7 }
 0x13a   :  { %v526_v44 = vadd.f32 %v525_v34, %v4000_v20 }
 0x13b   :  { %v527_v45 = vpop.f32.mrf.mxu1 }
 0x13c   :  { %v4134_v47 = vpack.c.bf16 %v526_v44, %v522_v37  ;;  %v528_v59 = vadd.f32 %v527_v45, %v4013_v31  ;;  %3332 = vmatpush3.bf16.msra.mxu1 %v4127_v61 }
 0x13d   :  { %v531_v48 = vpop.f32.mrf.mxu1  ;;  %3333 = vmatprep.subr.bf16.mxu1 %v3761_v7 }
 0x13e   :  { %v4141_v54 = vpack.c.bf16 %v528_v59, %v524_v43  ;;  %v532_v25 = vadd.f32 %v531_v48, %v4000_v20  ;;  %v622_v59 = vsel %vm614_vm1, %v4018_v36, 0 }
 0x13f   :  { %v533_v56 = vpop.f32.mrf.mxu1  ;;  %3288 = vmatpush3.bf16.xpose.msra.mxu0 %v631_v55 }
 0x140   :  { %3334 = vmatpush3.bf16.msra.mxu1 %v4023_v40  ;;  %3289 = vmatprep.subr.bf16.mxu0 %v3761_v7  ;;  %v534_v62 = vadd.f32 %v533_v56, %v4013_v31 }
 0x141   :  { %v535_v0 = vpop.f32.mrf.mxu1  ;;  %3335 = vmatprep.subr.bf16.mxu1 %v3761_v7 }
 0x142   :  { %v536_v8 = vadd.f32 %v535_v0, %v4000_v20 }
 0x143   :  { %v537_v9 = vpop.f32.mrf.mxu1 }
 0x144   :  { %v4155_v1 = vpack.c.bf16 %v536_v8, %v532_v25  ;;  %v538_v21 = vadd.f32 %v537_v9, %v4013_v31  ;;  %3336 = vmatpush3.bf16.msra.mxu1 %v4150_v5  ;;  %v178_v8 = vadd.f32 %v4028_v41, %v4021_v38  ;;  %v619_v9 = vsel %vm614_vm1, %v4008_v26, 0 }
 0x145   :  { %v541_v12 = vpop.f32.mrf.mxu1  ;;  %3361 = vmatprep.subr.bf16.mxu1 %v3761_v7 }
 0x146   :  { %v4160_v13 = vpack.c.bf16 %v538_v21, %v534_v62 }
 0x147   :  { %v543_v63 = vpop.f32.mrf.mxu1  ;;  %3290 = vmatpush3.bf16.xpose.msra.mxu0 %v628_v60  ;;  %v4188_v60 = vpack.c.bf16 %v178_v8, %v178_v8 }
 0x148   :  { %3291 = vmatprep.subr.bf16.mxu0 %v3761_v7  ;;  %v544_v22 = vadd.f32 %v543_v63, %v4013_v31 }
 0x149   :  { %v545_v14 = vpop.f32.mrf.mxu1 }
 0x14b   :  { %v547_v57 = vpop.f32.mrf.mxu1 }
 0x14c   :  { %v548_v23 = vadd.f32 %v547_v57, %v4013_v31 }
 0x14d   :  { %v551_v27 = vpop.f32.mrf.mxu1 }
 0x14e   :  { %v4167_v30 = vpack.c.bf16 %v548_v23, %v544_v22 }
 0x14f   :  { %v553_v33 = vpop.f32.mrf.mxu1  ;;  %3292 = vmatpush3.bf16.xpose.msra.mxu0 %v625_v32 }
 0x150   :  { %3293 = vmatprep.subr.bf16.mxu0 %v3761_v7  ;;  %v554_v37 = vadd.f32 %v553_v33, %v4013_v31 }
 0x151   :  { %v555_v50 = vpop.f32.mrf.mxu1 }
 0x152   :  { %v556_v33 = vadd.f32 %v555_v50, %v4000_v20 }
 0x153   :  { %v557_v34 = vpop.f32.mrf.mxu1 }
 0x154   :  { %v558_v44 = vadd.f32 %v557_v34, %v4013_v31 }
 0x155   :  { %v561_v45 = vpop.f32.mrf.mxu1 }
 0x156   :  { %v4174_v43 = vpack.c.bf16 %v558_v44, %v554_v37  ;;  %v562_v41 = vadd.f32 %v561_v45, %v4000_v20  ;;  %v552_v37 = vadd.f32 %v551_v27, %v4000_v20  ;;  %v695_v27 = vsel %vm614_vm1, %v4155_v1, 0 }
 0x157   :  { %v563_v48 = vpop.f32.mrf.mxu1  ;;  %3294 = vmatpush3.bf16.xpose.msra.mxu0 %v622_v59  ;;  %v546_v59 = vadd.f32 %v545_v14, %v4000_v20  ;;  %v692_v14 = vsel %vm614_vm1, %v4134_v47, 0 }
 0x158   :  { %3295 = vmatprep.subr.bf16.mxu0 %v3761_v7  ;;  %v564_v56 = vadd.f32 %v563_v48, %v4013_v31  ;;  %v4212_v44 = vpack.c.bf16 %v556_v33, %v552_v37  ;;  %v542_v48 = vadd.f32 %v541_v12, %v4000_v20 }
 0x159   :  { %v565_v49 = vpop.f32.mrf.mxu1 }
 0x15a   :  { %v566_v23 = vadd.f32 %v565_v49, %v4000_v20  ;;  %v701_v45 = vsel %vm614_vm1, %v4212_v44, 0  ;;  %v4219_v50 = vpack.c.bf16 %v546_v59, %v542_v48 }
 0x15b   :  { %v567_v55 = vpop.f32.mrf.mxu1 }
 0x15c   :  { %v568_v2 = vadd.f32 %v567_v55, %v4013_v31  ;;  %v4205_v32 = vpack.c.bf16 %v566_v23, %v562_v41  ;;  %v698_v49 = vsel %vm614_vm1, %v4219_v50, 0  ;;  %v686_v55 = vsel %vm614_vm1, %v4077_v52, 0 }
 0x15d   :  { %v571_v0 = vpop.f32.mrf.mxu1 }
 0x15e   :  { %v4181_v25 = vpack.c.bf16 %v568_v2, %v564_v56  ;;  %v572_v63 = vadd.f32 %v571_v0, %v4000_v20  ;;  %v704_v34 = vsel %vm614_vm1, %v4205_v32, 0  ;;  %v4240_v0 = vpack.c.bf16 %v4033_v46, %v4033_v46  ;;  %v4267_v46 = vld [vmem:[%s5040_s2] ss:$0 sm:$0xff] }
 0x15f   :  { %v573_v62 = vpop.f32.mrf.mxu1  ;;  %3296 = vmatpush3.bf16.xpose.msra.mxu0 %v619_v9 }
 0x160   :  { %3301 = vmatprep.subr.bf16.mxu0 %v3761_v7  ;;  %v574_v2 = vadd.f32 %v573_v62, %v4013_v31 }
 0x161   :  { %v575_v21 = vpop.f32.mrf.mxu1 }
 0x162   :  { %v576_v57 = vadd.f32 %v575_v21, %v4000_v20  ;;  %v689_v20 = vsel %vm614_vm1, %v4105_v18, 0 }
 0x163   :  { %v577_v12 = vpop.f32.mrf.mxu1 }
 0x164   :  { %v4192_v22 = vpack.c.bf16 %v576_v57, %v572_v63  ;;  %v578_v56 = vadd.f32 %v577_v12, %v4013_v31 }
 0x166   :  { %989 = vrot.lane.b32.xlu1 %v4192_v22, %s3763_s12  ;;  %3298 = vmatmul.mubr.msk.bf16.vlgmr.msra.gmra.mxu0 %vm614_vm1, %v4188_v60  ;;  %v707_v38 = vsel %vm614_vm1, %v4192_v22, 0  ;;  %v4242_v8 = vpack.c.bf16 %v578_v56, %v574_v2 }
 0x167   :  { %3302 = vmatpush3.bf16.xpose.msra.mxu0 %v707_v38  ;;  %3317 = vmatprep.mubr.msk.bf16.mxu0 %vm3762_vm0, %v3761_v7  ;;  %v4273_v38 = vld [vmem:[%s5040_s2 + $0x1] ss:$0 sm:$0xff] }
 0x168   :  { %3303 = vmatprep.subr.bf16.mxu0 %v3761_v7 }
 0x16f   :  { %3304 = vmatpush3.bf16.xpose.msra.mxu0 %v704_v34 }
 0x170   :  { %3305 = vmatprep.subr.bf16.mxu0 %v3761_v7 }
 0x177   :  { %3306 = vmatpush3.bf16.xpose.msra.mxu0 %v701_v45 }
 0x178   :  { %3307 = vmatprep.subr.bf16.mxu0 %v3761_v7 }
 0x17f   :  { %3308 = vmatpush3.bf16.xpose.msra.mxu0 %v698_v49 }
 0x180   :  { %3309 = vmatprep.subr.bf16.mxu0 %v3761_v7 }
 0x187   :  { %3310 = vmatpush3.bf16.xpose.msra.mxu0 %v695_v27 }
 0x188   :  { %3311 = vmatprep.subr.bf16.mxu0 %v3761_v7 }
 0x18f   :  { %3312 = vmatpush3.bf16.xpose.msra.mxu0 %v692_v14 }
 0x190   :  { %3313 = vmatprep.subr.bf16.mxu0 %v3761_v7 }
 0x197   :  { %3314 = vmatpush3.bf16.xpose.msra.mxu0 %v689_v20 }
 0x198   :  { %3315 = vmatprep.subr.bf16.mxu0 %v3761_v7 }
 0x19f   :  { %3316 = vmatpush3.bf16.xpose.msra.mxu0 %v686_v55 }
 0x1a0   :  { %3341 = vmatprep.subr.bf16.mxu0 %v3761_v7 }
 0x1a6   :  { %3318 = vmatmul.mubr.msk.bf16.vlgmr.msra.gmra.mxu0 %vm614_vm1, %v4240_v0 }
 0x1a7   :  { %3342 = vmatpush3.bf16.msra.mxu0 %v4242_v8  ;;  %3357 = vmatprep.mubr.msk.bf16.mxu0 %vm3762_vm0, %v3761_v7 }
 0x1a8   :  { %3343 = vmatprep.subr.bf16.mxu0 %v3761_v7 }
 0x1ab   :  { %3344 = vmatpush3.bf16.msra.mxu0 %v4181_v25 }
 0x1ac   :  { %3345 = vmatprep.subr.bf16.mxu0 %v3761_v7 }
 0x1af   :  { %3346 = vmatpush3.bf16.msra.mxu0 %v4174_v43 }
 0x1b0   :  { %3347 = vmatprep.subr.bf16.mxu0 %v3761_v7 }
 0x1b3   :  { %3348 = vmatpush3.bf16.msra.mxu0 %v4167_v30 }
 0x1b4   :  { %3349 = vmatprep.subr.bf16.mxu0 %v3761_v7 }
 0x1b7   :  { %3350 = vmatpush3.bf16.msra.mxu0 %v4160_v13 }
 0x1b8   :  { %3351 = vmatprep.subr.bf16.mxu0 %v3761_v7 }
 0x1bb   :  { %3352 = vmatpush3.bf16.msra.mxu0 %v4141_v54 }
 0x1bc   :  { %3353 = vmatprep.subr.bf16.mxu0 %v3761_v7 }
 0x1bf   :  { %3354 = vmatpush3.bf16.msra.mxu0 %v4116_v53 }
 0x1c0   :  { %3355 = vmatprep.subr.bf16.mxu0 %v3761_v7 }
 0x1c3   :  { %3356 = vmatpush3.bf16.msra.mxu0 %v4086_v4 }
 0x1c4   :  { %3381 = vmatprep.subr.bf16.mxu0 %v3761_v7 }
 0x1d8   :  { %v990_v56 = vpop.permute.xlu1 %989 }
 0x226   :  { %v676_v31 = vpop.f32.mrf.mxu0 }
 0x227   :  { %v749_v9 = vmul.f32 0.17677669, %v676_v31 }
 0x228   :  { %v3299_v62 = vpop.f32.mrf.mxu0 }
 0x229   :  { %v763_v21 = vadd.f32 %v4267_v46, %v749_v9 }
 0x22a   :  { %v679_v63 = vpop.f32.mrf.mxu0 }
 0x22b   :  { %765 = vmax.xlane.f32.xlu0 %v763_v21 }
 0x22c   :  { %v3300_v57 = vpop.f32.mrf.mxu0 }
 0x266   :  { %v743_v23 = vpop.f32.mrf.mxu0 }
 0x267   :  { %v750_v41 = vmul.f32 0.17677669, %v743_v23 }
 0x268   :  { %v3319_v33 = vpop.f32.mrf.mxu0 }
 0x269   :  { %v764_v34 = vadd.f32 %v4273_v38, %v750_v41 }
 0x26a   :  { %v746_v37 = vpop.f32.mrf.mxu0 }
 0x26b   :  { %767 = vmax.xlane.f32.xlu0 %v764_v34 }
 0x26c   :  { %v3320_v59 = vpop.f32.mrf.mxu0 }
 0x281   :  { %895 = vrot.lane.b32.xlu0 %v4054_v19, %s3763_s12 }
 0x285   :  { %891 = vrot.lane.b32.xlu0 %v4098_v11, %s3763_s12 }
 0x289   :  { %889 = vrot.lane.b32.xlu0 %v4129_v35, %s3763_s12 }
 0x28d   :  { %887 = vrot.lane.b32.xlu0 %v4045_v58, %s3763_s12 }
 0x291   :  { %885 = vrot.lane.b32.xlu0 %v4039_v51, %s3763_s12 }
 0x295   :  { %883 = vrot.lane.b32.xlu0 %v4018_v36, %s3763_s12 }
 0x299   :  { %881 = vrot.lane.b32.xlu0 %v4008_v26, %s3763_s12 }
 0x29d   :  { %871 = vrot.lane.b32.xlu0 %v4188_v60, %s3763_s12 }
 0x2b4   :  { %v766_v45 = vpop.xlane.xlu0 %765 }
 0x2b5   :  { %v769_v48 = vsub.f32 %v763_v21, %v766_v45 }
 0x2b7   :  { %v771_v49 = vmul.f32 1.442695, %v769_v48 }
 0x2b9   :  { %3690 = vpow2.f32 %v771_v49  ;;  %v1016_v49 = vsel %vm614_vm1, %v990_v56, 0 }
 0x2c6   :  { %v3691_v27 = vpop.eup %3690 }
 0x2c7   :  { %775 = vadd.xlane.f32.xlu1 %v3691_v27 }
 0x2f4   :  { %v768_v14 = vpop.xlane.xlu0 %767 }
 0x2f5   :  { %v770_v20 = vsub.f32 %v764_v34, %v768_v14 }
 0x2f7   :  { %v773_v12 = vmul.f32 1.442695, %v770_v20 }
 0x2f8   :  { %v896_v62 = vpop.permute.xlu0 %895 }
 0x2f9   :  { %3692 = vpow2.f32 %v773_v12  ;;  %v922_v63 = vsel %vm614_vm1, %v896_v62, 0 }
 0x2fc   :  { %v892_v33 = vpop.permute.xlu0 %891 }
 0x2fd   :  { %v916_v34 = vsel %vm614_vm1, %v892_v33, 0 }
 0x300   :  { %v890_v48 = vpop.permute.xlu0 %889 }
 0x304   :  { %v888_v20 = vpop.permute.xlu0 %887 }
 0x306   :  { %v3693_v55 = vpop.eup %3692 }
 0x307   :  { %777 = vadd.xlane.f32.xlu1 %v3693_v55 }
 0x318   :  { %893 = vrot.lane.b32.xlu1 %v4069_v39, %s3763_s12 }
 0x31c   :  { %987 = vrot.lane.b32.xlu1 %v4205_v32, %s3763_s12 }
 0x320   :  { %985 = vrot.lane.b32.xlu1 %v4212_v44, %s3763_s12 }
 0x324   :  { %983 = vrot.lane.b32.xlu1 %v4219_v50, %s3763_s12 }
 0x328   :  { %981 = vrot.lane.b32.xlu1 %v4155_v1, %s3763_s12 }
 0x32c   :  { %979 = vrot.lane.b32.xlu1 %v4134_v47, %s3763_s12 }
 0x330   :  { %977 = vrot.lane.b32.xlu1 %v4105_v18, %s3763_s12 }
 0x334   :  { %975 = vrot.lane.b32.xlu1 %v4077_v52, %s3763_s12 }
 0x338   :  { %965 = vrot.lane.b32.xlu1 %v4240_v0, %s3763_s12 }
 0x350   :  { %v776_v2 = vpop.xlane.xlu1 %775 }
 0x351   :  { %3694 = vrcp.f32 %v776_v2  ;;  %v886_v2 = vpop.permute.xlu0 %885 }
 0x352   :  { %v907_v62 = vsel %vm614_vm1, %v886_v2, 0 }
 0x35e   :  { %v3695_v31 = vpop.eup %3694 }
 0x35f   :  { %v4310_v9 = vmul.f32 %v3695_v31, %v3691_v27  ;;  %v913_v27 = vsel %vm614_vm1, %v890_v48, 0 }
 0x361   :  { %v783_v21 = vpack.c.bf16 %v4310_v9, %v4310_v9 }
 0x363   :  { %3338 = vmatmul.mubr.bf16.vlgmr.msra.gmra.mxu1 %v783_v21 }
 0x364   :  { %3362 = vmatpush3.bf16.xpose.msra.mxu1 %v922_v63  ;;  %3377 = vmatprep.mubr.msk.bf16.mxu1 %vm3762_vm0, %v3761_v7  ;;  %v884_v63 = vpop.permute.xlu0 %883 }
 0x365   :  { %3363 = vmatprep.subr.bf16.mxu1 %v3761_v7 }
 0x368   :  { %v882_v33 = vpop.permute.xlu0 %881 }
 0x390   :  { %v778_v57 = vpop.xlane.xlu1 %777 }
 0x391   :  { %3696 = vrcp.f32 %v778_v57 }
 0x394   :  { %v894_v23 = vpop.permute.xlu1 %893 }
 0x395   :  { %v919_v41 = vsel %vm614_vm1, %v894_v23, 0  ;;  %v904_v23 = vsel %vm614_vm1, %v884_v63, 0 }
 0x396   :  { %3364 = vmatpush3.bf16.xpose.msra.mxu1 %v919_v41 }
 0x397   :  { %3365 = vmatprep.subr.bf16.mxu1 %v3761_v7 }
 0x398   :  { %v988_v14 = vpop.permute.xlu1 %987 }
 0x399   :  { %v1013_v12 = vsel %vm614_vm1, %v988_v14, 0 }
 0x39c   :  { %v986_v56 = vpop.permute.xlu1 %985 }
 0x39d   :  { %v1010_v31 = vsel %vm614_vm1, %v986_v56, 0 }
 0x39e   :  { %v3697_v37 = vpop.eup %3696  ;;  %3366 = vmatpush3.bf16.xpose.msra.mxu1 %v916_v34 }
 0x39f   :  { %v4321_v59 = vmul.f32 %v3697_v37, %v3693_v55  ;;  %3367 = vmatprep.subr.bf16.mxu1 %v3761_v7  ;;  %v910_v55 = vsel %vm614_vm1, %v888_v20, 0  ;;  %v901_v37 = vsel %vm614_vm1, %v882_v33, 0 }
 0x3a0   :  { %v984_v21 = vpop.permute.xlu1 %983 }
 0x3a1   :  { %v784_v45 = vpack.c.bf16 %v4321_v59, %v4321_v59  ;;  %v1007_v57 = vsel %vm614_vm1, %v984_v21, 0 }
 0x3a3   :  { %3358 = vmatmul.mubr.bf16.vlgmr.msra.gmra.mxu0 %v784_v45 }
 0x3a4   :  { %3382 = vmatpush3.bf16.xpose.msra.mxu0 %v1016_v49  ;;  %3397 = vmatprep.mubr.msk.bf16.mxu0 %vm3762_vm0, %v3761_v7  ;;  %v982_v41 = vpop.permute.xlu1 %981  ;;  %v872_v49 = vpop.permute.xlu0 %871 }
 0x3a5   :  { %3383 = vmatprep.subr.bf16.mxu0 %v3761_v7  ;;  %v1004_v34 = vsel %vm614_vm1, %v982_v41, 0 }
 0x3a6   :  { %3368 = vmatpush3.bf16.xpose.msra.mxu1 %v913_v27 }
 0x3a7   :  { %3369 = vmatprep.subr.bf16.mxu1 %v3761_v7 }
 0x3a8   :  { %v980_v45 = vpop.permute.xlu1 %979 }
 0x3a9   :  { %v1001_v48 = vsel %vm614_vm1, %v980_v45, 0 }
 0x3ac   :  { %3384 = vmatpush3.bf16.xpose.msra.mxu0 %v1013_v12  ;;  %v978_v27 = vpop.permute.xlu1 %977 }
 0x3ad   :  { %3385 = vmatprep.subr.bf16.mxu0 %v3761_v7  ;;  %v998_v14 = vsel %vm614_vm1, %v978_v27, 0 }
 0x3ae   :  { %3370 = vmatpush3.bf16.xpose.msra.mxu1 %v910_v55 }
 0x3af   :  { %3371 = vmatprep.subr.bf16.mxu1 %v3761_v7 }
 0x3b0   :  { %v976_v20 = vpop.permute.xlu1 %975 }
 0x3b1   :  { %v995_v12 = vsel %vm614_vm1, %v976_v20, 0 }
 0x3b4   :  { %3386 = vmatpush3.bf16.xpose.msra.mxu0 %v1010_v31  ;;  %v966_v55 = vpop.permute.xlu1 %965 }
 0x3b5   :  { %3387 = vmatprep.subr.bf16.mxu0 %v3761_v7 }
 0x3b6   :  { %3372 = vmatpush3.bf16.xpose.msra.mxu1 %v907_v62 }
 0x3b7   :  { %3373 = vmatprep.subr.bf16.mxu1 %v3761_v7 }
 0x3bc   :  { %3388 = vmatpush3.bf16.xpose.msra.mxu0 %v1007_v57 }
 0x3bd   :  { %3389 = vmatprep.subr.bf16.mxu0 %v3761_v7 }
 0x3be   :  { %3374 = vmatpush3.bf16.xpose.msra.mxu1 %v904_v23 }
 0x3bf   :  { %3375 = vmatprep.subr.bf16.mxu1 %v3761_v7 }
 0x3c4   :  { %3390 = vmatpush3.bf16.xpose.msra.mxu0 %v1004_v34 }
 0x3c5   :  { %3391 = vmatprep.subr.bf16.mxu0 %v3761_v7 }
 0x3c6   :  { %3376 = vmatpush3.bf16.xpose.msra.mxu1 %v901_v37 }
 0x3c7   :  { %3401 = vmatprep.subr.bf16.mxu1 %v3761_v7 }
 0x3cc   :  { %3392 = vmatpush3.bf16.xpose.msra.mxu0 %v1001_v48 }
 0x3cd   :  { %3378 = vmatmul.mubr.msk.bf16.vlgmr.msra.gmra.mxu1 %vm614_vm1, %v872_v49  ;;  %3393 = vmatprep.subr.bf16.mxu0 %v3761_v7 }
 0x3ce   :  { %3417 = vmatprep.mubr.msk.bf16.mxu1 %vm3762_vm0, %v3761_v7 }
 0x3d4   :  { %3394 = vmatpush3.bf16.xpose.msra.mxu0 %v998_v14 }
 0x3d5   :  { %3395 = vmatprep.subr.bf16.mxu0 %v3761_v7 }
 0x3dc   :  { %3396 = vmatpush3.bf16.xpose.msra.mxu0 %v995_v12 }
 0x3dd   :  { %3421 = vmatprep.subr.bf16.mxu0 %v3761_v7 }
 0x3e3   :  { %3398 = vmatmul.mubr.msk.bf16.vlgmr.msra.gmra.mxu0 %vm614_vm1, %v966_v55 }
 0x3e4   :  { %3437 = vmatprep.mubr.msk.bf16.mxu0 %vm3762_vm0, %v3761_v7 }
 0x423   :  { %v4360_v56 = vpop.f32.mrf.mxu1 }
 0x425   :  { %v3339_v2 = vpop.f32.mrf.mxu1 }
 0x427   :  { %v822_v31 = vpop.f32.mrf.mxu1 }
 0x429   :  { %v3340_v62 = vpop.f32.mrf.mxu1 }
 0x463   :  { %v4362_v21 = vpop.f32.mrf.mxu0 }
 0x464   :  { %v865_v63 = vpack.c.bf16 %v4362_v21, %v4360_v56 }
 0x465   :  { %v3359_v57 = vpop.f32.mrf.mxu0 }
 0x467   :  { %v862_v23 = vpop.f32.mrf.mxu0 }
 0x469   :  { %v3360_v41 = vpop.f32.mrf.mxu0 }
 0x48d   :  { %v958_v33 = vpop.f32.mrf.mxu1 }
 0x48e   :  { %v1058_v34 = vmul.f32 0.17677669, %v958_v33 }
 0x48f   :  { %v3379_v37 = vpop.f32.mrf.mxu1 }
 0x490   :  { %v1060_v45 = vadd.f32 %v4267_v46, %v1058_v34 }
 0x491   :  { %v961_v48 = vpop.f32.mrf.mxu1 }
 0x492   :  { %1062 = vmax.xlane.f32.xlu0 %v1060_v45 }
 0x493   :  { %v3380_v49 = vpop.f32.mrf.mxu1 }
 0x4a3   :  { %v1052_v27 = vpop.f32.mrf.mxu0 }
 0x4a4   :  { %v1059_v14 = vmul.f32 0.17677669, %v1052_v27 }
 0x4a5   :  { %v3399_v20 = vpop.f32.mrf.mxu0 }
 0x4a6   :  { %v1061_v12 = vadd.f32 %v4273_v38, %v1059_v14 }
 0x4a7   :  { %v1055_v55 = vpop.f32.mrf.mxu0 }
 0x4a8   :  { %1064 = vmax.xlane.f32.xlu1 %v1061_v12  ;;  %1106 = vrot.lane.b32.xlu0 %v4059_v29, %s3763_s12 }
 0x4a9   :  { %v3400_v2 = vpop.f32.mrf.mxu0 }
 0x4ac   :  { %1104 = vrot.lane.b32.xlu0 %v4071_v42, %s3763_s12 }
 0x4b0   :  { %1102 = vrot.lane.b32.xlu0 %v4084_v3, %s3763_s12 }
 0x4b4   :  { %1100 = vrot.lane.b32.xlu0 %v4096_v10, %s3763_s12 }
 0x4b8   :  { %1098 = vrot.lane.b32.xlu0 %v4112_v24, %s3763_s12 }
 0x4b9   :  { %1178 = vrot.lane.b32.xlu1 %v4242_v8, %s3763_s12 }
 0x4bc   :  { %1096 = vrot.lane.b32.xlu0 %v4127_v61, %s3763_s12 }
 0x4bd   :  { %1176 = vrot.lane.b32.xlu1 %v4181_v25, %s3763_s12 }
 0x4c0   :  { %1094 = vrot.lane.b32.xlu0 %v4023_v40, %s3763_s12 }
 0x4c1   :  { %1174 = vrot.lane.b32.xlu1 %v4174_v43, %s3763_s12 }
 0x4c5   :  { %1172 = vrot.lane.b32.xlu1 %v4167_v30, %s3763_s12 }
 0x4c9   :  { %1170 = vrot.lane.b32.xlu1 %v4160_v13, %s3763_s12 }
 0x4cd   :  { %1168 = vrot.lane.b32.xlu1 %v4141_v54, %s3763_s12 }
 0x4d1   :  { %1166 = vrot.lane.b32.xlu1 %v4116_v53, %s3763_s12 }
 0x51b   :  { %v1063_v31 = vpop.xlane.xlu0 %1062 }
 0x51c   :  { %v1066_v62 = vsub.f32 %v1060_v45, %v1063_v31 }
 0x51e   :  { %v1068_v57 = vmul.f32 1.442695, %v1066_v62 }
 0x51f   :  { %v1107_v23 = vpop.permute.xlu0 %1106 }
 0x520   :  { %3698 = vpow2.f32 %v1068_v57  ;;  %3402 = vmatpush3.bf16.msra.mxu1 %v1107_v23 }
 0x521   :  { %3403 = vmatprep.subr.bf16.mxu1 %v3761_v7 }
 0x523   :  { %v1105_v41 = vpop.permute.xlu0 %1104 }
 0x524   :  { %3404 = vmatpush3.bf16.msra.mxu1 %v1105_v41 }
 0x525   :  { %3405 = vmatprep.subr.bf16.mxu1 %v3761_v7 }
 0x527   :  { %v1103_v33 = vpop.permute.xlu0 %1102 }
 0x528   :  { %3406 = vmatpush3.bf16.msra.mxu1 %v1103_v33 }
 0x529   :  { %3407 = vmatprep.subr.bf16.mxu1 %v3761_v7 }
 0x52b   :  { %v1101_v34 = vpop.permute.xlu0 %1100 }
 0x52c   :  { %3408 = vmatpush3.bf16.msra.mxu1 %v1101_v34 }
 0x52d   :  { %v4399_v37 = vpop.eup %3698  ;;  %3409 = vmatprep.subr.bf16.mxu1 %v3761_v7 }
 0x52e   :  { %1072 = vadd.xlane.f32.xlu0 %v4399_v37 }
 0x52f   :  { %v1099_v45 = vpop.permute.xlu0 %1098 }
 0x530   :  { %3410 = vmatpush3.bf16.msra.mxu1 %v1099_v45 }
 0x531   :  { %v1065_v48 = vpop.xlane.xlu1 %1064  ;;  %3411 = vmatprep.subr.bf16.mxu1 %v3761_v7 }
 0x532   :  { %v1067_v49 = vsub.f32 %v1061_v12, %v1065_v48 }
 0x533   :  { %v1097_v27 = vpop.permute.xlu0 %1096 }
 0x534   :  { %v1070_v14 = vmul.f32 1.442695, %v1067_v49  ;;  %3412 = vmatpush3.bf16.msra.mxu1 %v1097_v27 }
 0x535   :  { %v1179_v20 = vpop.permute.xlu1 %1178  ;;  %3413 = vmatprep.subr.bf16.mxu1 %v3761_v7 }
 0x536   :  { %3700 = vpow2.f32 %v1070_v14  ;;  %3422 = vmatpush3.bf16.msra.mxu0 %v1179_v20 }
 0x537   :  { %v1095_v55 = vpop.permute.xlu0 %1094  ;;  %3423 = vmatprep.subr.bf16.mxu0 %v3761_v7 }
 0x538   :  { %3414 = vmatpush3.bf16.msra.mxu1 %v1095_v55 }
 0x539   :  { %v1177_v2 = vpop.permute.xlu1 %1176  ;;  %3415 = vmatprep.subr.bf16.mxu1 %v3761_v7 }
 0x53a   :  { %3424 = vmatpush3.bf16.msra.mxu0 %v1177_v2 }
 0x53b   :  { %3425 = vmatprep.subr.bf16.mxu0 %v3761_v7 }
 0x53d   :  { %v1175_v31 = vpop.permute.xlu1 %1174 }
 0x53e   :  { %3426 = vmatpush3.bf16.msra.mxu0 %v1175_v31 }
 0x53f   :  { %3427 = vmatprep.subr.bf16.mxu0 %v3761_v7 }
 0x541   :  { %v1173_v12 = vpop.permute.xlu1 %1172 }
 0x542   :  { %3428 = vmatpush3.bf16.msra.mxu0 %v1173_v12 }
 0x543   :  { %v3701_v62 = vpop.eup %3700  ;;  %3429 = vmatprep.subr.bf16.mxu0 %v3761_v7 }
 0x544   :  { %1074 = vadd.xlane.f32.xlu1 %v3701_v62  ;;  %1092 = vrot.lane.b32.xlu0 %v4150_v5, %s3763_s12 }
 0x545   :  { %v1171_v57 = vpop.permute.xlu1 %1170 }
 0x546   :  { %3430 = vmatpush3.bf16.msra.mxu0 %v1171_v57 }
 0x547   :  { %3431 = vmatprep.subr.bf16.mxu0 %v3761_v7 }
 0x548   :  { %1361 = vrot.lane.b32.xlu0 %v4054_v19, %s3764_s17 }
 0x549   :  { %v1169_v23 = vpop.permute.xlu1 %1168 }
 0x54a   :  { %3432 = vmatpush3.bf16.msra.mxu0 %v1169_v23 }
 0x54b   :  { %3433 = vmatprep.subr.bf16.mxu0 %v3761_v7 }
 0x54c   :  { %1359 = vrot.lane.b32.xlu0 %v4069_v39, %s3764_s17 }
 0x54d   :  { %v1167_v41 = vpop.permute.xlu1 %1166 }
 0x54e   :  { %3434 = vmatpush3.bf16.msra.mxu0 %v1167_v41 }
 0x54f   :  { %3435 = vmatprep.subr.bf16.mxu0 %v3761_v7 }
 0x550   :  { %1357 = vrot.lane.b32.xlu0 %v4098_v11, %s3764_s17 }
 0x554   :  { %1355 = vrot.lane.b32.xlu0 %v4129_v35, %s3764_s17 }
 0x555   :  { %1164 = vrot.lane.b32.xlu1 %v4086_v4, %s3763_s12 }
 0x558   :  { %1353 = vrot.lane.b32.xlu0 %v4045_v58, %s3764_s17 }
 0x559   :  { %1446 = vrot.lane.b32.xlu1 %v4192_v22, %s3764_s17 }
 0x55c   :  { %1351 = vrot.lane.b32.xlu0 %v4039_v51, %s3764_s17 }
 0x55d   :  { %1444 = vrot.lane.b32.xlu1 %v4205_v32, %s3764_s17 }
 0x560   :  { %1349 = vrot.lane.b32.xlu0 %v4018_v36, %s3764_s17 }
 0x561   :  { %1442 = vrot.lane.b32.xlu1 %v4212_v44, %s3764_s17 }
 0x564   :  { %1347 = vrot.lane.b32.xlu0 %v4008_v26, %s3764_s17 }
 0x565   :  { %1440 = vrot.lane.b32.xlu1 %v4219_v50, %s3764_s17 }
 0x568   :  { %1345 = vrot.lane.b32.xlu0 %v4188_v60, %s3764_s17 }
 0x569   :  { %1438 = vrot.lane.b32.xlu1 %v4155_v1, %s3764_s17 }
 0x56d   :  { %1436 = vrot.lane.b32.xlu1 %v4134_v47, %s3764_s17 }
 0x571   :  { %1434 = vrot.lane.b32.xlu1 %v4105_v18, %s3764_s17 }
 0x575   :  { %1432 = vrot.lane.b32.xlu1 %v4077_v52, %s3764_s17 }
 0x579   :  { %1430 = vrot.lane.b32.xlu1 %v4240_v0, %s3764_s17 }
 0x5b7   :  { %v1073_v33 = vpop.xlane.xlu0 %1072 }
 0x5b8   :  { %3702 = vrcp.f32 %v1073_v33 }
 0x5bb   :  { %v1093_v34 = vpop.permute.xlu0 %1092 }
 0x5bc   :  { %3416 = vmatpush3.bf16.msra.mxu1 %v1093_v34 }
 0x5bd   :  { %3441 = vmatprep.subr.bf16.mxu1 %v3761_v7 }
 0x5c5   :  { %v3703_v45 = vpop.eup %3702 }
 0x5c6   :  { %v4455_v48 = vmul.f32 %v3703_v45, %v4399_v37 }
 0x5c8   :  { %v1082_v49 = vpack.c.bf16 %v4455_v48, %v4455_v48 }
 0x5ca   :  { %3418 = vmatmul.mubr.bf16.vlgmr.msra.gmra.mxu1 %v1082_v49 }
 0x5cb   :  { %3445 = vmatprep.mubr.msk.bf16.mxu1 %vm3762_vm0, %v3761_v7 }
 0x5cd   :  { %v1075_v27 = vpop.xlane.xlu1 %1074 }
 0x5ce   :  { %3704 = vrcp.f32 %v1075_v27 }
 0x5d1   :  { %v1165_v14 = vpop.permute.xlu1 %1164 }
 0x5d2   :  { %3436 = vmatpush3.bf16.msra.mxu0 %v1165_v14 }
 0x5d3   :  { %3477 = vmatprep.subr.bf16.mxu0 %v3761_v7 }
 0x5d5   :  { %v1447_v2 = vpop.permute.xlu1 %1446 }
 0x5d6   :  { %v1473_v31 = vsel %vm614_vm1, %v1447_v2, 0  ;;  %v1231_v2 = vld [vmem:[%s5041_s3 + $0xcc] sm:$0xf] }
 0x5d9   :  { %v1445_v12 = vpop.permute.xlu1 %1444 }
 0x5da   :  { %v1470_v57 = vsel %vm614_vm1, %v1445_v12, 0 }
 0x5db   :  { %v3705_v20 = vpop.eup %3704 }
 0x5dc   :  { %v4462_v55 = vmul.f32 %v3705_v20, %v3701_v62 }
 0x5dd   :  { %v1443_v62 = vpop.permute.xlu1 %1442 }
 0x5de   :  { %v1083_v37 = vpack.c.bf16 %v4462_v55, %v4462_v55  ;;  %v1467_v23 = vsel %vm614_vm1, %v1443_v62, 0 }
 0x5e0   :  { %3438 = vmatmul.mubr.bf16.vlgmr.msra.gmra.mxu0 %v1083_v37  ;;  %v1232_v37 = vld [vmem:[%s5041_s3 + $0xec] sm:$0xf] }
 0x5e1   :  { %3478 = vmatpush3.bf16.xpose.msra.mxu0 %v1473_v31  ;;  %3493 = vmatprep.mubr.msk.bf16.mxu0 %vm3762_vm0, %v3761_v7  ;;  %v1441_v41 = vpop.permute.xlu1 %1440  ;;  %v1229_v31 = vld [vmem:[%s5041_s3 + $0x8c] sm:$0xf]  ;;  %v2967_v12 = vcombine.low %v1231_v2, %v1232_v37 }
 0x5e2   :  { %3479 = vmatprep.subr.bf16.mxu0 %v3761_v7  ;;  %v1464_v33 = vsel %vm614_vm1, %v1441_v41, 0 }
 0x5e3   :  { %3442 = vmatpush3.bf16.msra.mxu1 %v2967_v12  ;;  %v866_v12 = vld [vmem:[%s5041_s3 + $0xc] sm:$0xf] }
 0x5e4   :  { %3443 = vmatprep.subr.bf16.mxu1 %v3761_v7 }
 0x5e5   :  { %v1439_v34 = vpop.permute.xlu1 %1438 }
 0x5e6   :  { %v1461_v45 = vsel %vm614_vm1, %v1439_v34, 0 }
 0x5e9   :  { %3480 = vmatpush3.bf16.xpose.msra.mxu0 %v1470_v57  ;;  %v1437_v49 = vpop.permute.xlu1 %1436  ;;  %v1230_v57 = vld [vmem:[%s5041_s3 + $0xac] sm:$0xf] }
 0x5ea   :  { %3481 = vmatprep.subr.bf16.mxu0 %v3761_v7  ;;  %v1458_v27 = vsel %vm614_vm1, %v1437_v49, 0  ;;  %v2966_v62 = vcombine.low %v1229_v31, %v1230_v57  ;;  %v867_v57 = vld [vmem:[%s5041_s3 + $0x2c] sm:$0xf] }
 0x5ec   :  { %3444 = vmatpush3.bf16.msra.mxu1 %v2966_v62 }
 0x5ed   :  { %v1435_v14 = vpop.permute.xlu1 %1434  ;;  %3449 = vmatprep.subr.bf16.mxu1 %v3761_v7 }
 0x5ee   :  { %v1455_v20 = vsel %vm614_vm1, %v1435_v14, 0  ;;  %v868_v14 = vld [vmem:[%s5041_s3 + $0x4c] sm:$0xf] }
 0x5f1   :  { %3482 = vmatpush3.bf16.xpose.msra.mxu0 %v1467_v23  ;;  %v1433_v23 = vpop.permute.xlu1 %1432 }
 0x5f2   :  { %3483 = vmatprep.subr.bf16.mxu0 %v3761_v7  ;;  %v1452_v41 = vsel %vm614_vm1, %v1433_v23, 0 }
 0x5f9   :  { %3484 = vmatpush3.bf16.xpose.msra.mxu0 %v1464_v33  ;;  %v1431_v33 = vpop.permute.xlu1 %1430 }
 0x5fa   :  { %3485 = vmatprep.subr.bf16.mxu0 %v3761_v7 }
 0x601   :  { %3486 = vmatpush3.bf16.xpose.msra.mxu0 %v1461_v45 }
 0x602   :  { %3487 = vmatprep.subr.bf16.mxu0 %v3761_v7 }
 0x609   :  { %3488 = vmatpush3.bf16.xpose.msra.mxu0 %v1458_v27 }
 0x60a   :  { %3489 = vmatprep.subr.bf16.mxu0 %v3761_v7 }
 0x611   :  { %3490 = vmatpush3.bf16.xpose.msra.mxu0 %v1455_v20  ;;  %v869_v20 = vld [vmem:[%s5041_s3 + $0x6c] sm:$0xf] }
 0x612   :  { %3491 = vmatprep.subr.bf16.mxu0 %v3761_v7  ;;  %v2970_v37 = vcombine.low %v868_v14, %v869_v20 }
 0x619   :  { %3492 = vmatpush3.bf16.xpose.msra.mxu0 %v1452_v41  ;;  %v2969_v41 = vcombine.low %v866_v12, %v867_v57 }
 0x61a   :  { %3517 = vmatprep.subr.bf16.mxu0 %v3761_v7 }
 0x620   :  { %3494 = vmatmul.mubr.msk.bf16.vlgmr.msra.gmra.mxu0 %vm614_vm1, %v1431_v33 }
 0x621   :  { %3533 = vmatprep.mubr.msk.bf16.mxu0 %vm3762_vm0, %v3761_v7 }
 0x68a   :  { %v1150_v34 = vpop.f32.mrf.mxu1 }
 0x68c   :  { %v3419_v45 = vpop.f32.mrf.mxu1 }
 0x68e   :  { %v1153_v49 = vpop.f32.mrf.mxu1 }
 0x690   :  { %v3420_v27 = vpop.f32.mrf.mxu1 }
 0x6a0   :  { %v1222_v2 = vpop.f32.mrf.mxu0 }
 0x6a1   :  { %v1228_v31 = vpack.c.bf16 %v1222_v2, %v1150_v34  ;;  %v1362_v34 = vpop.permute.xlu0 %1361 }
 0x6a2   :  { %v3439_v62 = vpop.f32.mrf.mxu0  ;;  %v1388_v45 = vsel %vm614_vm1, %v1362_v34, 0 }
 0x6a3   :  { %3446 = vmatmul.mubr.msk.bf16.vlgmr.msra.gmra.mxu1 %vm614_vm1, %v1228_v31 }
 0x6a4   :  { %3450 = vmatpush3.bf16.msra.mxu1 %v2970_v37  ;;  %v1225_v23 = vpop.f32.mrf.mxu0  ;;  %3453 = vmatprep.mubr.msk.bf16.mxu1 %vm3762_vm0, %v3761_v7 }
 0x6a5   :  { %3451 = vmatprep.subr.bf16.mxu1 %v3761_v7  ;;  %v1360_v49 = vpop.permute.xlu0 %1359 }
 0x6a6   :  { %v3440_v33 = vpop.f32.mrf.mxu0  ;;  %v1385_v27 = vsel %vm614_vm1, %v1360_v49, 0 }
 0x6a8   :  { %3452 = vmatpush3.bf16.msra.mxu1 %v2969_v41 }
 0x6a9   :  { %3457 = vmatprep.subr.bf16.mxu1 %v3761_v7  ;;  %v1358_v14 = vpop.permute.xlu0 %1357 }
 0x6aa   :  { %v1382_v20 = vsel %vm614_vm1, %v1358_v14, 0 }
 0x6ab   :  { %3454 = vmatmul.mubr.msk.bf16.vlgmr.msra.gmra.mxu1 %vm614_vm1, %v865_v63 }
 0x6ac   :  { %3458 = vmatpush3.bf16.xpose.msra.mxu1 %v1388_v45  ;;  %3473 = vmatprep.mubr.msk.bf16.mxu1 %vm3762_vm0, %v3761_v7 }
 0x6ad   :  { %3459 = vmatprep.subr.bf16.mxu1 %v3761_v7  ;;  %v1356_v56 = vpop.permute.xlu0 %1355 }
 0x6ae   :  { %v1379_v21 = vsel %vm614_vm1, %v1356_v56, 0 }
 0x6b1   :  { %v1354_v63 = vpop.permute.xlu0 %1353 }
 0x6b2   :  { %v1376_v2 = vsel %vm614_vm1, %v1354_v63, 0 }
 0x6b4   :  { %3460 = vmatpush3.bf16.xpose.msra.mxu1 %v1385_v27 }
 0x6b5   :  { %3461 = vmatprep.subr.bf16.mxu1 %v3761_v7  ;;  %v1352_v37 = vpop.permute.xlu0 %1351 }
 0x6b6   :  { %v1373_v31 = vsel %vm614_vm1, %v1352_v37, 0 }
 0x6b9   :  { %v1350_v12 = vpop.permute.xlu0 %1349 }
 0x6ba   :  { %v1370_v57 = vsel %vm614_vm1, %v1350_v12, 0 }
 0x6bc   :  { %3462 = vmatpush3.bf16.xpose.msra.mxu1 %v1382_v20 }
 0x6bd   :  { %3463 = vmatprep.subr.bf16.mxu1 %v3761_v7  ;;  %v1348_v62 = vpop.permute.xlu0 %1347 }
 0x6be   :  { %v1367_v34 = vsel %vm614_vm1, %v1348_v62, 0 }
 0x6c1   :  { %v1346_v14 = vpop.permute.xlu0 %1345 }
 0x6c4   :  { %3464 = vmatpush3.bf16.xpose.msra.mxu1 %v1379_v21 }
 0x6c5   :  { %3465 = vmatprep.subr.bf16.mxu1 %v3761_v7 }
 0x6cc   :  { %3466 = vmatpush3.bf16.xpose.msra.mxu1 %v1376_v2 }
 0x6cd   :  { %3467 = vmatprep.subr.bf16.mxu1 %v3761_v7 }
 0x6d4   :  { %3468 = vmatpush3.bf16.xpose.msra.mxu1 %v1373_v31 }
 0x6d5   :  { %3469 = vmatprep.subr.bf16.mxu1 %v3761_v7 }
 0x6dc   :  { %3470 = vmatpush3.bf16.xpose.msra.mxu1 %v1370_v57 }
 0x6dd   :  { %3471 = vmatprep.subr.bf16.mxu1 %v3761_v7 }
 0x6e0   :  { %v1509_v23 = vpop.f32.mrf.mxu0 }
 0x6e1   :  { %v1516_v41 = vmul.f32 0.17677669, %v1509_v23 }
 0x6e2   :  { %v3495_v33 = vpop.f32.mrf.mxu0 }
 0x6e3   :  { %v1518_v45 = vadd.f32 %v4273_v38, %v1516_v41 }
 0x6e4   :  { %3472 = vmatpush3.bf16.xpose.msra.mxu1 %v1367_v34  ;;  %v1512_v49 = vpop.f32.mrf.mxu0 }
 0x6e5   :  { %1521 = vmax.xlane.f32.xlu1 %v1518_v45  ;;  %3497 = vmatprep.subr.bf16.mxu1 %v3761_v7 }
 0x6e6   :  { %v3496_v27 = vpop.f32.mrf.mxu0 }
 0x6eb   :  { %3474 = vmatmul.mubr.msk.bf16.vlgmr.msra.gmra.mxu1 %vm614_vm1, %v1346_v14 }
 0x6ec   :  { %3513 = vmatprep.mubr.msk.bf16.mxu1 %vm3762_vm0, %v3761_v7 }
 0x6f6   :  { %1619 = vrot.lane.b32.xlu1 %v4242_v8, %s3764_s17 }
 0x763   :  { %v1282_v20 = vpop.f32.mrf.mxu1 }
 0x765   :  { %v3447_v56 = vpop.f32.mrf.mxu1 }
 0x767   :  { %v1285_v21 = vpop.f32.mrf.mxu1 }
 0x769   :  { %v3448_v63 = vpop.f32.mrf.mxu1 }
 0x76b   :  { %v1338_v38 = vpop.f32.mrf.mxu1 }
 0x76c   :  { %v4546_v2 = vadd.f32 %v1338_v38, %v1282_v20 }
 0x76d   :  { %v3455_v37 = vpop.f32.mrf.mxu1 }
 0x76e   :  { %v1522_v31 = vpop.xlane.xlu1 %1521 }
 0x76f   :  { %v1524_v12 = vsub.f32 %v1518_v45, %v1522_v31  ;;  %v1341_v57 = vpop.f32.mrf.mxu1 }
 0x770   :  { %v4548_v62 = vadd.f32 %v1341_v57, %v1285_v21 }
 0x771   :  { %v1527_v23 = vmul.f32 1.442695, %v1524_v12  ;;  %v3456_v41 = vpop.f32.mrf.mxu1 }
 0x772   :  { %v1620_v33 = vpop.permute.xlu1 %1619 }
 0x773   :  { %3706 = vpow2.f32 %v1527_v23  ;;  %3518 = vmatpush3.bf16.msra.mxu0 %v1620_v33 }
 0x774   :  { %3519 = vmatprep.subr.bf16.mxu0 %v3761_v7 }
 0x780   :  { %v3707_v34 = vpop.eup %3706 }
 0x781   :  { %1531 = vadd.xlane.f32.xlu1 %v3707_v34 }
 0x792   :  { %1617 = vrot.lane.b32.xlu1 %v4181_v25, %s3764_s17 }
 0x796   :  { %1615 = vrot.lane.b32.xlu1 %v4174_v43, %s3764_s17 }
 0x79a   :  { %1613 = vrot.lane.b32.xlu1 %v4167_v30, %s3764_s17 }
 0x79e   :  { %1611 = vrot.lane.b32.xlu1 %v4160_v13, %s3764_s17 }
 0x7a2   :  { %1609 = vrot.lane.b32.xlu1 %v4141_v54, %s3764_s17 }
 0x7a6   :  { %1607 = vrot.lane.b32.xlu1 %v4116_v53, %s3764_s17 }
 0x7aa   :  { %1605 = vrot.lane.b32.xlu1 %v4086_v4, %s3764_s17 }
 0x7ab   :  { %v1424_v45 = vpop.f32.mrf.mxu1 }
 0x7ac   :  { %v1515_v49 = vmul.f32 0.17677669, %v1424_v45 }
 0x7ad   :  { %v3475_v27 = vpop.f32.mrf.mxu1 }
 0x7ae   :  { %1833 = vrot.lane.b32.xlu1 %v4192_v22, %s3765_s1  ;;  %v1517_v14 = vadd.f32 %v4267_v46, %v1515_v49 }
 0x7af   :  { %v1427_v20 = vpop.f32.mrf.mxu1 }
 0x7b0   :  { %1519 = vmax.xlane.f32.xlu0 %v1517_v14 }
 0x7b1   :  { %v3476_v56 = vpop.f32.mrf.mxu1 }
 0x7b2   :  { %1831 = vrot.lane.b32.xlu1 %v4205_v32, %s3765_s1 }
 0x7b6   :  { %1829 = vrot.lane.b32.xlu1 %v4212_v44, %s3765_s1  ;;  %v1081_v44 = vadd.f32 %v4462_v55, %v4321_v59 }
 0x7ba   :  { %1827 = vrot.lane.b32.xlu1 %v4219_v50, %s3765_s1 }
 0x7be   :  { %1825 = vrot.lane.b32.xlu1 %v4155_v1, %s3765_s1 }
 0x7c2   :  { %1823 = vrot.lane.b32.xlu1 %v4134_v47, %s3765_s1 }
 0x7c6   :  { %1555 = vrot.lane.b32.xlu0 %v4059_v29, %s3764_s17  ;;  %1821 = vrot.lane.b32.xlu1 %v4105_v18, %s3765_s1 }
 0x7ca   :  { %1553 = vrot.lane.b32.xlu0 %v4071_v42, %s3764_s17  ;;  %1819 = vrot.lane.b32.xlu1 %v4077_v52, %s3765_s1 }
 0x7ce   :  { %1551 = vrot.lane.b32.xlu0 %v4084_v3, %s3764_s17  ;;  %1817 = vrot.lane.b32.xlu1 %v4240_v0, %s3765_s1 }
 0x7d2   :  { %1549 = vrot.lane.b32.xlu0 %v4096_v10, %s3764_s17 }
 0x7d6   :  { %1547 = vrot.lane.b32.xlu0 %v4112_v24, %s3764_s17 }
 0x7da   :  { %1545 = vrot.lane.b32.xlu0 %v4127_v61, %s3764_s17 }
 0x7de   :  { %1543 = vrot.lane.b32.xlu0 %v4023_v40, %s3764_s17 }
 0x80a   :  { %v1532_v18 = vpop.xlane.xlu1 %1531 }
 0x80b   :  { %3708 = vrcp.f32 %v1532_v18 }
 0x80e   :  { %v1618_v52 = vpop.permute.xlu1 %1617 }
 0x80f   :  { %3520 = vmatpush3.bf16.msra.mxu0 %v1618_v52 }
 0x810   :  { %3521 = vmatprep.subr.bf16.mxu0 %v3761_v7 }
 0x812   :  { %v1616_v47 = vpop.permute.xlu1 %1615 }
 0x813   :  { %3522 = vmatpush3.bf16.msra.mxu0 %v1616_v47 }
 0x814   :  { %3523 = vmatprep.subr.bf16.mxu0 %v3761_v7 }
 0x816   :  { %v1614_v1 = vpop.permute.xlu1 %1613 }
 0x817   :  { %3524 = vmatpush3.bf16.msra.mxu0 %v1614_v1 }
 0x818   :  { %v3709_v22 = vpop.eup %3708  ;;  %3525 = vmatprep.subr.bf16.mxu0 %v3761_v7 }
 0x819   :  { %v1536_v32 = vmul.f32 %v3709_v22, %v3707_v34 }
 0x81a   :  { %v1612_v50 = vpop.permute.xlu1 %1611 }
 0x81b   :  { %3526 = vmatpush3.bf16.msra.mxu0 %v1612_v50  ;;  %v4603_v0 = vadd.f32 %v1536_v32, %v1081_v44  ;;  %v1540_v38 = vpack.c.bf16 %v1536_v32, %v1536_v32 }
 0x81c   :  { %3527 = vmatprep.subr.bf16.mxu0 %v3761_v7 }
 0x81e   :  { %v1610_v46 = vpop.permute.xlu1 %1609 }
 0x81f   :  { %3528 = vmatpush3.bf16.msra.mxu0 %v1610_v46 }
 0x820   :  { %3529 = vmatprep.subr.bf16.mxu0 %v3761_v7 }
 0x822   :  { %v1608_v21 = vpop.permute.xlu1 %1607 }
 0x823   :  { %3530 = vmatpush3.bf16.msra.mxu0 %v1608_v21 }
 0x824   :  { %3531 = vmatprep.subr.bf16.mxu0 %v3761_v7 }
 0x826   :  { %v1606_v63 = vpop.permute.xlu1 %1605 }
 0x827   :  { %3532 = vmatpush3.bf16.msra.mxu0 %v1606_v63 }
 0x828   :  { %3565 = vmatprep.subr.bf16.mxu0 %v3761_v7 }
 0x82a   :  { %3534 = vmatmul.mubr.bf16.vlgmr.msra.gmra.mxu0 %v1540_v38  ;;  %v1834_v59 = vpop.permute.xlu1 %1833 }
 0x82b   :  { %v1860_v55 = vsel %vm614_vm1, %v1834_v59, 0  ;;  %3581 = vmatprep.mubr.msk.bf16.mxu0 %vm3762_vm0, %v3761_v7  ;;  %v1670_v59 = vld [vmem:[%s5041_s3 + $0x10c] sm:$0xf] }
 0x82c   :  { %3566 = vmatpush3.bf16.xpose.msra.mxu0 %v1860_v55  ;;  %v1671_v55 = vld [vmem:[%s5041_s3 + $0x12c] sm:$0xf] }
 0x82d   :  { %3567 = vmatprep.subr.bf16.mxu0 %v3761_v7 }
 0x82e   :  { %v1832_v37 = vpop.permute.xlu1 %1831 }
 0x82f   :  { %v1857_v31 = vsel %vm614_vm1, %v1832_v37, 0 }
 0x832   :  { %v1830_v12 = vpop.permute.xlu1 %1829 }
 0x833   :  { %v1854_v41 = vsel %vm614_vm1, %v1830_v12, 0 }
 0x834   :  { %3568 = vmatpush3.bf16.xpose.msra.mxu0 %v1857_v31  ;;  %v2974_v31 = vcombine.low %v1670_v59, %v1671_v55 }
 0x835   :  { %3569 = vmatprep.subr.bf16.mxu0 %v3761_v7 }
 0x836   :  { %v1828_v45 = vpop.permute.xlu1 %1827 }
 0x837   :  { %v1851_v27 = vsel %vm614_vm1, %v1828_v45, 0 }
 0x839   :  { %v1520_v57 = vpop.xlane.xlu0 %1519 }
 0x83a   :  { %v1523_v23 = vsub.f32 %v1517_v14, %v1520_v57  ;;  %v1826_v20 = vpop.permute.xlu1 %1825 }
 0x83b   :  { %v1848_v52 = vsel %vm614_vm1, %v1826_v20, 0 }
 0x83c   :  { %v1525_v33 = vmul.f32 1.442695, %v1523_v23  ;;  %3570 = vmatpush3.bf16.xpose.msra.mxu0 %v1854_v41 }
 0x83d   :  { %v1556_v34 = vpop.permute.xlu0 %1555  ;;  %3571 = vmatprep.subr.bf16.mxu0 %v3761_v7 }
 0x83e   :  { %3710 = vpow2.f32 %v1525_v33  ;;  %3498 = vmatpush3.bf16.msra.mxu1 %v1556_v34  ;;  %v1824_v1 = vpop.permute.xlu1 %1823  ;;  %v3734_v34 = vld [vmem:[%s5040_s2 + $0x1] ss:$0 sm:$0xff] }
 0x83f   :  { %3499 = vmatprep.subr.bf16.mxu1 %v3761_v7  ;;  %v1845_v32 = vsel %vm614_vm1, %v1824_v1, 0 }
 0x841   :  { %v1554_v49 = vpop.permute.xlu0 %1553 }
 0x842   :  { %3500 = vmatpush3.bf16.msra.mxu1 %v1554_v49  ;;  %v1822_v50 = vpop.permute.xlu1 %1821 }
 0x843   :  { %3501 = vmatprep.subr.bf16.mxu1 %v3761_v7  ;;  %v1842_v46 = vsel %vm614_vm1, %v1822_v50, 0 }
 0x844   :  { %3572 = vmatpush3.bf16.xpose.msra.mxu0 %v1851_v27 }
 0x845   :  { %v1552_v14 = vpop.permute.xlu0 %1551  ;;  %3573 = vmatprep.subr.bf16.mxu0 %v3761_v7 }
 0x846   :  { %3502 = vmatpush3.bf16.msra.mxu1 %v1552_v14  ;;  %v1820_v21 = vpop.permute.xlu1 %1819 }
 0x847   :  { %3503 = vmatprep.subr.bf16.mxu1 %v3761_v7  ;;  %v1839_v63 = vsel %vm614_vm1, %v1820_v21, 0 }
 0x849   :  { %v1550_v56 = vpop.permute.xlu0 %1549 }
 0x84a   :  { %3504 = vmatpush3.bf16.msra.mxu1 %v1550_v56  ;;  %v1818_v38 = vpop.permute.xlu1 %1817 }
 0x84b   :  { %v3711_v18 = vpop.eup %3710  ;;  %3505 = vmatprep.subr.bf16.mxu1 %v3761_v7 }
 0x84c   :  { %1529 = vadd.xlane.f32.xlu0 %v3711_v18  ;;  %3574 = vmatpush3.bf16.xpose.msra.mxu0 %v1848_v52 }
 0x84d   :  { %v1548_v47 = vpop.permute.xlu0 %1547  ;;  %3575 = vmatprep.subr.bf16.mxu0 %v3761_v7 }
 0x84e   :  { %3506 = vmatpush3.bf16.msra.mxu1 %v1548_v47 }
 0x84f   :  { %3507 = vmatprep.subr.bf16.mxu1 %v3761_v7 }
 0x851   :  { %v1546_v22 = vpop.permute.xlu0 %1545 }
 0x852   :  { %3508 = vmatpush3.bf16.msra.mxu1 %v1546_v22 }
 0x853   :  { %3509 = vmatprep.subr.bf16.mxu1 %v3761_v7 }
 0x854   :  { %3576 = vmatpush3.bf16.xpose.msra.mxu0 %v1845_v32 }
 0x855   :  { %v1544_v44 = vpop.permute.xlu0 %1543  ;;  %3577 = vmatprep.subr.bf16.mxu0 %v3761_v7 }
 0x856   :  { %3510 = vmatpush3.bf16.msra.mxu1 %v1544_v44 }
 0x857   :  { %3511 = vmatprep.subr.bf16.mxu1 %v3761_v7 }
 0x85c   :  { %3578 = vmatpush3.bf16.xpose.msra.mxu0 %v1842_v46 }
 0x85d   :  { %3579 = vmatprep.subr.bf16.mxu0 %v3761_v7 }
 0x862   :  { %1541 = vrot.lane.b32.xlu0 %v4150_v5, %s3764_s17 }
 0x864   :  { %3580 = vmatpush3.bf16.xpose.msra.mxu0 %v1839_v63 }
 0x865   :  { %3605 = vmatprep.subr.bf16.mxu0 %v3761_v7 }
 0x866   :  { %1748 = vrot.lane.b32.xlu0 %v4054_v19, %s3765_s1 }
 0x86a   :  { %1746 = vrot.lane.b32.xlu0 %v4069_v39, %s3765_s1 }
 0x86b   :  { %3582 = vmatmul.mubr.msk.bf16.vlgmr.msra.gmra.mxu0 %vm614_vm1, %v1818_v38 }
 0x86c   :  { %3621 = vmatprep.mubr.msk.bf16.mxu0 %vm3762_vm0, %v3761_v7 }
 0x86e   :  { %1744 = vrot.lane.b32.xlu0 %v4098_v11, %s3765_s1 }
 0x872   :  { %1742 = vrot.lane.b32.xlu0 %v4129_v35, %s3765_s1 }
 0x876   :  { %1740 = vrot.lane.b32.xlu0 %v4045_v58, %s3765_s1  ;;  %v1672_v58 = vld [vmem:[%s5041_s3 + $0x14c] sm:$0xf] }
 0x87a   :  { %1738 = vrot.lane.b32.xlu0 %v4039_v51, %s3765_s1 }
 0x87e   :  { %1736 = vrot.lane.b32.xlu0 %v4018_v36, %s3765_s1  ;;  %v1673_v36 = vld [vmem:[%s5041_s3 + $0x16c] sm:$0xf] }
 0x87f   :  { %v2975_v35 = vcombine.low %v1672_v58, %v1673_v36 }
 0x882   :  { %1734 = vrot.lane.b32.xlu0 %v4008_v26, %s3765_s1  ;;  %v1080_v26 = vadd.f32 %v4455_v48, %v4310_v9 }
 0x886   :  { %1732 = vrot.lane.b32.xlu0 %v4188_v60, %s3765_s1 }
 0x8d5   :  { %v1530_v19 = vpop.xlane.xlu0 %1529 }
 0x8d6   :  { %3712 = vrcp.f32 %v1530_v19 }
 0x8d9   :  { %v1542_v39 = vpop.permute.xlu0 %1541 }
 0x8da   :  { %3512 = vmatpush3.bf16.msra.mxu1 %v1542_v39 }
 0x8db   :  { %3537 = vmatprep.subr.bf16.mxu1 %v3761_v7 }
 0x8dd   :  { %v1749_v14 = vpop.permute.xlu0 %1748 }
 0x8de   :  { %v1775_v52 = vsel %vm614_vm1, %v1749_v14, 0  ;;  %v3735_v14 = vld [vmem:[%s5040_s2] ss:$0 sm:$0xff] }
 0x8e1   :  { %v1747_v22 = vpop.permute.xlu0 %1746 }
 0x8e2   :  { %v1772_v32 = vsel %vm614_vm1, %v1747_v22, 0 }
 0x8e3   :  { %v3713_v51 = vpop.eup %3712 }
 0x8e4   :  { %v1535_v11 = vmul.f32 %v3713_v51, %v3711_v18 }
 0x8e6   :  { %v1539_v60 = vpack.c.bf16 %v1535_v11, %v1535_v11  ;;  %v4672_v37 = vadd.f32 %v1535_v11, %v1080_v26 }
 0x8e8   :  { %3514 = vmatmul.mubr.bf16.vlgmr.msra.gmra.mxu1 %v1539_v60 }
 0x8e9   :  { %3538 = vmatpush3.bf16.msra.mxu1 %v2975_v35  ;;  %3541 = vmatprep.mubr.msk.bf16.mxu1 %vm3762_vm0, %v3761_v7 }
 0x8ea   :  { %v1663_v12 = vpop.f32.mrf.mxu0  ;;  %3539 = vmatprep.subr.bf16.mxu1 %v3761_v7 }
 0x8ec   :  { %v3535_v9 = vpop.f32.mrf.mxu0 }
 0x8ed   :  { %3540 = vmatpush3.bf16.msra.mxu1 %v2974_v31 }
 0x8ee   :  { %v1666_v48 = vpop.f32.mrf.mxu0  ;;  %3545 = vmatprep.subr.bf16.mxu1 %v3761_v7 }
 0x8f0   :  { %v3536_v57 = vpop.f32.mrf.mxu0 }
 0x92b   :  { %v1896_v23 = vpop.f32.mrf.mxu0 }
 0x92c   :  { %v1903_v41 = vmul.f32 0.17677669, %v1896_v23 }
 0x92d   :  { %v3583_v33 = vpop.f32.mrf.mxu0 }
 0x92e   :  { %v1905_v45 = vadd.f32 %v3734_v34, %v1903_v41 }
 0x92f   :  { %v1899_v49 = vpop.f32.mrf.mxu0 }
 0x930   :  { %1908 = vmax.xlane.f32.xlu1 %v1905_v45 }
 0x931   :  { %v3584_v27 = vpop.f32.mrf.mxu0 }
 0x941   :  { %2006 = vrot.lane.b32.xlu1 %v4242_v8, %s3765_s1  ;;  %v1745_v8 = vpop.permute.xlu0 %1744 }
 0x942   :  { %v1769_v46 = vsel %vm614_vm1, %v1745_v8, 0 }
 0x945   :  { %v1743_v38 = vpop.permute.xlu0 %1742 }
 0x946   :  { %v1766_v19 = vsel %vm614_vm1, %v1743_v38, 0 }
 0x949   :  { %v1741_v39 = vpop.permute.xlu0 %1740 }
 0x94a   :  { %v1763_v36 = vsel %vm614_vm1, %v1741_v39, 0 }
 0x94d   :  { %v1739_v51 = vpop.permute.xlu0 %1738 }
 0x94e   :  { %v1760_v11 = vsel %vm614_vm1, %v1739_v51, 0 }
 0x951   :  { %v1737_v26 = vpop.permute.xlu0 %1736 }
 0x952   :  { %v1757_v35 = vsel %vm614_vm1, %v1737_v26, 0 }
 0x955   :  { %v1735_v60 = vpop.permute.xlu0 %1734 }
 0x956   :  { %v1754_v59 = vsel %vm614_vm1, %v1735_v60, 0 }
 0x959   :  { %v1733_v55 = vpop.permute.xlu0 %1732 }
 0x9a8   :  { %v1599_v20 = vpop.f32.mrf.mxu1 }
 0x9a9   :  { %v1669_v56 = vpack.c.bf16 %v1663_v12, %v1599_v20 }
 0x9aa   :  { %v3515_v18 = vpop.f32.mrf.mxu1 }
 0x9ab   :  { %3542 = vmatmul.mubr.msk.bf16.vlgmr.msra.gmra.mxu1 %vm614_vm1, %v1669_v56 }
 0x9ac   :  { %3546 = vmatpush3.bf16.xpose.msra.mxu1 %v1775_v52  ;;  %v1602_v47 = vpop.f32.mrf.mxu1  ;;  %3561 = vmatprep.mubr.msk.bf16.mxu1 %vm3762_vm0, %v3761_v7 }
 0x9ad   :  { %3547 = vmatprep.subr.bf16.mxu1 %v3761_v7 }
 0x9ae   :  { %v3516_v1 = vpop.f32.mrf.mxu1 }
 0x9b4   :  { %3548 = vmatpush3.bf16.xpose.msra.mxu1 %v1772_v32 }
 0x9b5   :  { %3549 = vmatprep.subr.bf16.mxu1 %v3761_v7 }
 0x9b9   :  { %v1909_v44 = vpop.xlane.xlu1 %1908 }
 0x9ba   :  { %v1911_v50 = vsub.f32 %v1905_v45, %v1909_v44 }
 0x9bc   :  { %v1914_v21 = vmul.f32 1.442695, %v1911_v50  ;;  %3550 = vmatpush3.bf16.xpose.msra.mxu1 %v1769_v46 }
 0x9bd   :  { %v2007_v63 = vpop.permute.xlu1 %2006  ;;  %3551 = vmatprep.subr.bf16.mxu1 %v3761_v7 }
 0x9be   :  { %3714 = vpow2.f32 %v1914_v21  ;;  %3606 = vmatpush3.bf16.msra.mxu0 %v2007_v63  ;;  %v2059_v21 = vld [vmem:[%s5041_s3 + $0x1cc] sm:$0xf] }
 0x9bf   :  { %3607 = vmatprep.subr.bf16.mxu0 %v3761_v7  ;;  %v2060_v63 = vld [vmem:[%s5041_s3 + $0x1ec] sm:$0xf] }
 0x9c0   :  { %v2980_v39 = vcombine.low %v2059_v21, %v2060_v63  ;;  %v2201_v63 = vld [vmem:[%s5041_s3 + $0x110] sm:$0xff] }
 0x9c4   :  { %3552 = vmatpush3.bf16.xpose.msra.mxu1 %v1766_v19 }
 0x9c5   :  { %3553 = vmatprep.subr.bf16.mxu1 %v3761_v7 }
 0x9cb   :  { %v3715_v58 = vpop.eup %3714 }
 0x9cc   :  { %3554 = vmatpush3.bf16.xpose.msra.mxu1 %v1763_v36  ;;  %1918 = vadd.xlane.f32.xlu1 %v3715_v58  ;;  %v2058_v36 = vld [vmem:[%s5041_s3 + $0x1ac] sm:$0xf] }
 0x9cd   :  { %3555 = vmatprep.subr.bf16.mxu1 %v3761_v7 }
 0x9d4   :  { %3556 = vmatpush3.bf16.xpose.msra.mxu1 %v1760_v11 }
 0x9d5   :  { %3557 = vmatprep.subr.bf16.mxu1 %v3761_v7 }
 0x9dc   :  { %3558 = vmatpush3.bf16.xpose.msra.mxu1 %v1757_v35 }
 0x9dd   :  { %2004 = vrot.lane.b32.xlu1 %v4181_v25, %s3765_s1  ;;  %3559 = vmatprep.subr.bf16.mxu1 %v3761_v7 }
 0x9e1   :  { %2002 = vrot.lane.b32.xlu1 %v4174_v43, %s3765_s1 }
 0x9e4   :  { %3560 = vmatpush3.bf16.xpose.msra.mxu1 %v1754_v59 }
 0x9e5   :  { %2000 = vrot.lane.b32.xlu1 %v4167_v30, %s3765_s1  ;;  %3585 = vmatprep.subr.bf16.mxu1 %v3761_v7 }
 0x9e9   :  { %1998 = vrot.lane.b32.xlu1 %v4160_v13, %s3765_s1 }
 0x9eb   :  { %3562 = vmatmul.mubr.msk.bf16.vlgmr.msra.gmra.mxu1 %vm614_vm1, %v1733_v55 }
 0x9ec   :  { %3601 = vmatprep.mubr.msk.bf16.mxu1 %vm3762_vm0, %v3761_v7 }
 0x9ed   :  { %1996 = vrot.lane.b32.xlu1 %v4141_v54, %s3765_s1 }
 0x9f1   :  { %1994 = vrot.lane.b32.xlu1 %v4116_v53, %s3765_s1 }
 0x9f5   :  { %1992 = vrot.lane.b32.xlu1 %v4086_v4, %s3765_s1 }
 0xa55   :  { %v1919_v30 = vpop.xlane.xlu1 %1918 }
 0xa56   :  { %3716 = vrcp.f32 %v1919_v30 }
 0xa59   :  { %v2005_v43 = vpop.permute.xlu1 %2004 }
 0xa5a   :  { %3608 = vmatpush3.bf16.msra.mxu0 %v2005_v43 }
 0xa5b   :  { %3609 = vmatprep.subr.bf16.mxu0 %v3761_v7 }
 0xa5d   :  { %v2003_v13 = vpop.permute.xlu1 %2002 }
 0xa5e   :  { %3610 = vmatpush3.bf16.msra.mxu0 %v2003_v13 }
 0xa5f   :  { %3611 = vmatprep.subr.bf16.mxu0 %v3761_v7 }
 0xa61   :  { %v2001_v25 = vpop.permute.xlu1 %2000 }
 0xa62   :  { %3612 = vmatpush3.bf16.msra.mxu0 %v2001_v25 }
 0xa63   :  { %v3717_v31 = vpop.eup %3716  ;;  %3613 = vmatprep.subr.bf16.mxu0 %v3761_v7 }
 0xa64   :  { %v1923_v54 = vmul.f32 %v3717_v31, %v3715_v58 }
 0xa65   :  { %v1999_v53 = vpop.permute.xlu1 %1998 }
 0xa66   :  { %3614 = vmatpush3.bf16.msra.mxu0 %v1999_v53  ;;  %v4724_v4 = vadd.f32 %v1923_v54, %v4603_v0  ;;  %v1927_v45 = vpack.c.bf16 %v1923_v54, %v1923_v54  ;;  %v3736_v54 = vld [vmem:[%s5038_s0] sm:$0xff] }
 0xa67   :  { %3615 = vmatprep.subr.bf16.mxu0 %v3761_v7 }
 0xa69   :  { %v1997_v12 = vpop.permute.xlu1 %1996 }
 0xa6a   :  { %3616 = vmatpush3.bf16.msra.mxu0 %v1997_v12 }
 0xa6b   :  { %v1723_v9 = vpop.f32.mrf.mxu1  ;;  %3617 = vmatprep.subr.bf16.mxu0 %v3761_v7 }
 0xa6c   :  { %v4729_v48 = vadd.f32 %v1723_v9, %v4546_v2  ;;  %v3737_v9 = vld [vmem:[%s5038_s0 + $0x8] sm:$0xff]  ;;  %s3766_s0 = smov [#allocation2]  }
 0xa6d   :  { %v3543_v57 = vpop.f32.mrf.mxu1  ;;  %v1995_v23 = vpop.permute.xlu1 %1994  ;;  %s2904_s20 = sshll.u32 %s3766_s0, 4  ;;  %s2905_s20 = int_to_ptr.vmem [resolvable:$true] %s2904_s20 }
 0xa6e   :  { %3618 = vmatpush3.bf16.msra.mxu0 %v1995_v23  ;;  %v2215_v23 = vld [vmem:[%s5041_s3 + $0x1f0] sm:$0xff]  ;;  %p3743_p1 = scmp.lt.s32.totalorder %s2905_s20, %s2905_s20 }
 0xa6f   :  { %v1726_v41 = vpop.f32.mrf.mxu1  ;;  %3619 = vmatprep.subr.bf16.mxu0 %v3761_v7 }
 0xa70   :  { %v4733_v33 = vadd.f32 %v1726_v41, %v4548_v62  ;;  %v2214_v41 = vld [vmem:[%s5041_s3 + $0x1d8] sm:$0xff] }
 0xa71   :  { %v3544_v0 = vpop.f32.mrf.mxu1  ;;  %v1993_v34 = vpop.permute.xlu1 %1992 }
 0xa72   :  { %3620 = vmatpush3.bf16.msra.mxu0 %v1993_v34  ;;  %v2216_v34 = vld [vmem:[%s5041_s3 + $0x1f8] sm:$0xff] }
 0xa75   :  { %3622 = vmatmul.mubr.bf16.vlgmr.msra.gmra.mxu0 %v1927_v45  ;;  %v3015_v45 = vcombine.low %v2214_v41, %v2216_v34 }
 0xa76   :  { %2430 = vmatprep.mubr.bf16.mxu0 %v3760_v6 }
 0xaab   :  { %v1811_v49 = vpop.f32.mrf.mxu1 }
 0xaac   :  { %v1902_v27 = vmul.f32 0.17677669, %v1811_v49  ;;  %v3016_v49 = vcombine.high %v2214_v41, %v2216_v34  ;;  %v2187_v34 = vld [vmem:[%s5041_s3 + $0x30] sm:$0xff] }
 0xaad   :  { %v3563_v2 = vpop.f32.mrf.mxu1 }
 0xaae   :  { %v1904_v20 = vadd.f32 %v3735_v14, %v1902_v27 }
 0xaaf   :  { %v1814_v56 = vpop.f32.mrf.mxu1 }
 0xab0   :  { %1906 = vmax.xlane.f32.xlu0 %v1904_v20 }
 0xab1   :  { %v3564_v18 = vpop.f32.mrf.mxu1 }
 0xac6   :  { %1942 = vrot.lane.b32.xlu0 %v4059_v29, %s3765_s1 }
 0xaca   :  { %1940 = vrot.lane.b32.xlu0 %v4071_v42, %s3765_s1 }
 0xace   :  { %1938 = vrot.lane.b32.xlu0 %v4084_v3, %s3765_s1 }
 0xad2   :  { %1936 = vrot.lane.b32.xlu0 %v4096_v10, %s3765_s1 }
 0xad6   :  { %1934 = vrot.lane.b32.xlu0 %v4112_v24, %s3765_s1 }
 0xada   :  { %1932 = vrot.lane.b32.xlu0 %v4127_v61, %s3765_s1 }
 0xade   :  { %1930 = vrot.lane.b32.xlu0 %v4023_v40, %s3765_s1 }
 0xb35   :  { %v2050_v62 = vpop.f32.mrf.mxu0 }
 0xb37   :  { %v3623_v29 = vpop.f32.mrf.mxu0 }
 0xb39   :  { %v1907_v52 = vpop.xlane.xlu0 %1906  ;;  %v2053_v47 = vpop.f32.mrf.mxu0 }
 0xb3a   :  { %v1910_v42 = vsub.f32 %v1904_v20, %v1907_v52  ;;  %v2209_v52 = vld [vmem:[%s5041_s3 + $0x190] sm:$0xff] }
 0xb3b   :  { %v3624_v1 = vpop.f32.mrf.mxu0  ;;  %v2211_v47 = vld [vmem:[%s5041_s3 + $0x1b0] sm:$0xff] }
 0xb3c   :  { %v1912_v22 = vmul.f32 1.442695, %v1910_v42  ;;  %v2210_v42 = vld [vmem:[%s5041_s3 + $0x198] sm:$0xff]  ;;  %v3010_v1 = vcombine.high %v2209_v52, %v2211_v47 }
 0xb3d   :  { %v1943_v3 = vpop.permute.xlu0 %1942 }
 0xb3e   :  { %3718 = vpow2.f32 %v1912_v22  ;;  %3586 = vmatpush3.bf16.msra.mxu1 %v1943_v3  ;;  %v2212_v22 = vld [vmem:[%s5041_s3 + $0x1b8] sm:$0xff]  ;;  %v3009_v3 = vcombine.low %v2209_v52, %v2211_v47 }
 0xb3f   :  { %3587 = vmatprep.subr.bf16.mxu1 %v3761_v7  ;;  %v3658_v52 = vld [vmem:[%s5042_s4 + $0x78] sm:$0xff]  }
 0xb40   :  { %v3659_v47 = vld [vmem:[%s5042_s4 + $0xf8] sm:$0xff]  }
 0xb41   :  { %v1941_v10 = vpop.permute.xlu0 %1940 }
 0xb42   :  { %3588 = vmatpush3.bf16.msra.mxu1 %v1941_v10  ;;  %v3011_v10 = vcombine.low %v2210_v42, %v2212_v22 }
 0xb43   :  { %3589 = vmatprep.subr.bf16.mxu1 %v3761_v7 }
 0xb45   :  { %v1939_v24 = vpop.permute.xlu0 %1938 }
 0xb46   :  { %3590 = vmatpush3.bf16.msra.mxu1 %v1939_v24  ;;  %v3012_v24 = vcombine.high %v2210_v42, %v2212_v22 }
 0xb47   :  { %3591 = vmatprep.subr.bf16.mxu1 %v3761_v7 }
 0xb49   :  { %v1937_v40 = vpop.permute.xlu0 %1936 }
 0xb4a   :  { %3592 = vmatpush3.bf16.msra.mxu1 %v1937_v40  ;;  %v2205_v40 = vld [vmem:[%s5041_s3 + $0x150] sm:$0xff] }
 0xb4b   :  { %v3719_v61 = vpop.eup %3718  ;;  %3593 = vmatprep.subr.bf16.mxu1 %v3761_v7 }
 0xb4c   :  { %1916 = vadd.xlane.f32.xlu0 %v3719_v61 }
 0xb4d   :  { %v1935_v32 = vpop.permute.xlu0 %1934 }
 0xb4e   :  { %3594 = vmatpush3.bf16.msra.mxu1 %v1935_v32  ;;  %v2206_v32 = vld [vmem:[%s5041_s3 + $0x158] sm:$0xff] }
 0xb4f   :  { %3595 = vmatprep.subr.bf16.mxu1 %v3761_v7 }
 0xb51   :  { %v1933_v8 = vpop.permute.xlu0 %1932 }
 0xb52   :  { %3596 = vmatpush3.bf16.msra.mxu1 %v1933_v8 }
 0xb53   :  { %3597 = vmatprep.subr.bf16.mxu1 %v3761_v7 }
 0xb55   :  { %v1931_v44 = vpop.permute.xlu0 %1930 }
 0xb56   :  { %3598 = vmatpush3.bf16.msra.mxu1 %v1931_v44  ;;  %v2208_v44 = vld [vmem:[%s5041_s3 + $0x178] sm:$0xff] }
 0xb57   :  { %3599 = vmatprep.subr.bf16.mxu1 %v3761_v7  ;;  %v3008_v21 = vcombine.high %v2206_v32, %v2208_v44 }
 0xb62   :  { %1928 = vrot.lane.b32.xlu0 %v4150_v5, %s3765_s1  ;;  %v2057_v5 = vld [vmem:[%s5041_s3 + $0x18c] sm:$0xf] }
 0xb63   :  { %v2979_v11 = vcombine.low %v2057_v5, %v2058_v36  ;;  %v2204_v5 = vld [vmem:[%s5041_s3 + $0x138] sm:$0xff]  ;;  %v2197_v36 = vld [vmem:[%s5041_s3 + $0xd0] sm:$0xff] }
 0xbd5   :  { %v1917_v50 = vpop.xlane.xlu0 %1916 }
 0xbd6   :  { %3720 = vrcp.f32 %v1917_v50 }
 0xbd9   :  { %v1929_v46 = vpop.permute.xlu0 %1928 }
 0xbda   :  { %3600 = vmatpush3.bf16.msra.mxu1 %v1929_v46  ;;  %v3007_v46 = vcombine.low %v2206_v32, %v2208_v44  ;;  %v2983_v32 = vld [vmem:[%s5043_s5 + $0x9] ss:$0 sm:$0xff] }
 0xbdb   :  { %3625 = vmatprep.subr.bf16.mxu1 %v3761_v7 }
 0xbe3   :  { %v3721_v38 = vpop.eup %3720 }
 0xbe4   :  { %v1922_v19 = vmul.f32 %v3721_v38, %v3719_v61  ;;  %v2207_v61 = vld [vmem:[%s5041_s3 + $0x170] sm:$0xff] }
 0xbe5   :  { %v3006_v8 = vcombine.high %v2205_v40, %v2207_v61  ;;  %v3005_v50 = vcombine.low %v2205_v40, %v2207_v61  ;;  %v2203_v38 = vld [vmem:[%s5041_s3 + $0x130] sm:$0xff] }
 0xbe6   :  { %v1926_v58 = vpack.c.bf16 %v1922_v19, %v1922_v19  ;;  %v4776_v51 = vadd.f32 %v1922_v19, %v4672_v37  ;;  %v2982_v37 = vld [vmem:[%s5043_s5 + $0x3] ss:$0 sm:$0xff]  ;;  %v2202_v19 = vld [vmem:[%s5041_s3 + $0x118] sm:$0xff] }
 0xbe8   :  { %3602 = vmatmul.mubr.bf16.vlgmr.msra.gmra.mxu1 %v1926_v58  ;;  %v3002_v58 = vcombine.high %v2201_v63, %v2203_v38 }
 0xbe9   :  { %3626 = vmatpush3.bf16.msra.mxu1 %v2980_v39  ;;  %3629 = vmatprep.mubr.msk.bf16.mxu1 %vm3762_vm0, %v3761_v7  ;;  %v3001_v39 = vcombine.low %v2201_v63, %v2203_v38 }
 0xbea   :  { %3627 = vmatprep.subr.bf16.mxu1 %v3761_v7 }
 0xbed   :  { %3628 = vmatpush3.bf16.msra.mxu1 %v2979_v11  ;;  %v2199_v11 = vld [vmem:[%s5041_s3 + $0xf0] sm:$0xff] }
 0xbee   :  { %2441 = vmatprep.subr.bf16.mxu1 %v3016_v49  ;;  %v2188_v49 = vld [vmem:[%s5041_s3 + $0x38] sm:$0xff] }
 0xca8   :  { %v1986_v26 = vpop.f32.mrf.mxu1 }
 0xca9   :  { %v2056_v35 = vpack.c.bf16 %v2050_v62, %v1986_v26  ;;  %v3003_v26 = vcombine.low %v2202_v19, %v2204_v5 }
 0xcaa   :  { %v3603_v60 = vpop.f32.mrf.mxu1 }
 0xcab   :  { %3630 = vmatmul.mubr.msk.bf16.vlgmr.msra.gmra.mxu1 %vm614_vm1, %v2056_v35  ;;  %v3004_v35 = vcombine.high %v2202_v19, %v2204_v5  ;;  %v2998_v60 = vcombine.high %v2197_v36, %v2199_v11  ;;  %v3661_v19 = vld [vmem:[%s5042_s4 + $0xb8] sm:$0xff]   ;;  %v3664_v5 = vld [vmem:[%s5042_s4 + $0x30] sm:$0xff]  }
 0xcac   :  { %v1989_v59 = vpop.f32.mrf.mxu1  ;;  %2473 = vmatprep.mubr.bf16.mxu1 %v3760_v6  ;;  %2442 = vmatpush1.bf16.msra.mxu1 %v3015_v45  ;;  %v2186_v45 = vld [vmem:[%s5041_s3 + $0x18] sm:$0xff] }
 0xcad   :  { %2443 = vmatprep.subr.bf16.mxu1 %v3012_v24  ;;  %v2198_v59 = vld [vmem:[%s5041_s3 + $0xd8] sm:$0xff] }
 0xcae   :  { %v3604_v55 = vpop.f32.mrf.mxu1 }
 0xcaf   :  { %v2200_v55 = vld [vmem:[%s5041_s3 + $0xf8] sm:$0xff] }
 0xcb0   :  { %2444 = vmatpush1.bf16.msra.mxu1 %v3011_v10 }
 0xcb1   :  { %2445 = vmatprep.subr.bf16.mxu1 %v3008_v21 }
 0xcb4   :  { %2446 = vmatpush1.bf16.msra.mxu1 %v3007_v46  ;;  %v2984_v46 = vld [vmem:[%s5043_s5 + $0xa] ss:$0 sm:$0xff] }
 0xcb5   :  { %2447 = vmatprep.subr.bf16.mxu1 %v3004_v35  ;;  %v3668_v35 = vld [vmem:[%s5042_s4 + $0x28] sm:$0xff]  }
 0xcb8   :  { %2448 = vmatpush1.bf16.msra.mxu1 %v3003_v26  ;;  %v3667_v26 = vld [vmem:[%s5042_s4 + $0xe8] sm:$0xff]  }
 0xd6b   :  { %v2110_v30 = vpop.f32.mrf.mxu1 }
 0xd6c   :  { %v2117_v43 = vadd.f32 %v2110_v30, %v4729_v48  ;;  %v2213_v48 = vld [vmem:[%s5041_s3 + $0x1d0] sm:$0xff]  ;;  %v3000_v30 = vcombine.high %v2198_v59, %v2200_v55 }
 0xd6d   :  { %v3631_v13 = vpop.f32.mrf.mxu1  ;;  %v3014_v0 = vcombine.high %v2213_v48, %v2215_v23 }
 0xd6e   :  { %v2125_v25 = vadd.f32 %v2982_v37, %v2117_v43  ;;  %v2195_v43 = vld [vmem:[%s5041_s3 + $0xb0] sm:$0xff]  ;;  %v2194_v13 = vld [vmem:[%s5041_s3 + $0x98] sm:$0xff]  ;;  %2449 = vmatprep.subr.bf16.mxu1 %v3000_v30  ;;  %v3673_v30 = vld [vmem:[%s5042_s4 + $0xa0] sm:$0xff]  }
 0xd6f   :  { %v2113_v7 = vpop.f32.mrf.mxu1  ;;  %2398 = vmatprep.subr.bf16.mxu0 %v3014_v0  ;;  %v2185_v0 = vld [vmem:[%s5041_s3 + $0x10] sm:$0xff] }
 0xd70   :  { %v2118_v31 = vadd.f32 %v2113_v7, %v4733_v33  ;;  %v2143_v53 = vadd.f32 %v3736_v54, %v2125_v25  ;;  %v3013_v33 = vcombine.low %v2213_v48, %v2215_v23  ;;  %v2196_v25 = vld [vmem:[%s5041_s3 + $0xb8] sm:$0xff]  ;;  %v2997_v7 = vcombine.low %v2197_v36, %v2199_v11  ;;  %v3665_v36 = vld [vmem:[%s5042_s4 + $0xb0] sm:$0xff]   ;;  %v3666_v11 = vld [vmem:[%s5042_s4 + $0x68] sm:$0xff]  }
 0xd71   :  { %v3632_v12 = vpop.f32.mrf.mxu1  ;;  %v2995_v23 = vcombine.low %v2194_v13, %v2196_v25 }
 0xd72   :  { %v2126_v6 = vadd.f32 %v2982_v37, %v2118_v31  ;;  %2145 = vadd.xlane.f32.xlu0 %v2143_v53  ;;  %2399 = vmatpush1.bf16.msra.mxu0 %v3013_v33  ;;  %v2193_v37 = vld [vmem:[%s5041_s3 + $0x90] sm:$0xff]  ;;  %v2999_v31 = vcombine.low %v2198_v59, %v2200_v55  ;;  %v3670_v59 = vld [vmem:[%s5042_s4 + $0x60] sm:$0xff]  }
 0xd73   :  { %2400 = vmatprep.subr.bf16.mxu0 %v3010_v1  ;;  %v2994_v54 = vcombine.high %v2193_v37, %v2195_v43  ;;  %v2189_v12 = vld [vmem:[%s5041_s3 + $0x50] sm:$0xff]  ;;  %v2993_v48 = vcombine.low %v2193_v37, %v2195_v43  ;;  %v3671_v55 = vld [vmem:[%s5042_s4 + $0xe0] sm:$0xff]   ;;  %v3674_v43 = vld [vmem:[%s5042_s4 + $0x58] sm:$0xff]  }
 0xd74   :  { %v2144_v57 = vadd.f32 %v3737_v9, %v2126_v6  ;;  %v2191_v6 = vld [vmem:[%s5041_s3 + $0x70] sm:$0xff]  ;;  %v2190_v9 = vld [vmem:[%s5041_s3 + $0x58] sm:$0xff]  ;;  %2450 = vmatpush1.bf16.msra.mxu1 %v2999_v31  ;;  %v3672_v37 = vld [vmem:[%s5042_s4 + $0x20] sm:$0xff]  }
 0xd75   :  { %v2990_v41 = vcombine.high %v2189_v12, %v2191_v6  ;;  %v3678_v31 = vld [vmem:[%s5042_s4 + $0x50] sm:$0xff]  }
 0xd76   :  { %2147 = vadd.xlane.f32.xlu1 %v2144_v57  ;;  %2401 = vmatpush1.bf16.msra.mxu0 %v3009_v3 }
 0xd77   :  { %2402 = vmatprep.subr.bf16.mxu0 %v3006_v8 }
 0xd7a   :  { %2403 = vmatpush1.bf16.msra.mxu0 %v3005_v50 }
 0xd7b   :  { %2404 = vmatprep.subr.bf16.mxu0 %v3002_v58  ;;  %v3663_v58 = vld [vmem:[%s5042_s4 + $0xf0] sm:$0xff]  }
 0xd7e   :  { %2405 = vmatpush1.bf16.msra.mxu0 %v3001_v39  ;;  %v3662_v39 = vld [vmem:[%s5042_s4 + $0x70] sm:$0xff]  }
 0xd7f   :  { %2406 = vmatprep.subr.bf16.mxu0 %v2998_v60  ;;  %v3669_v60 = vld [vmem:[%s5042_s4 + $0xa8] sm:$0xff]  }
 0xd82   :  { %2407 = vmatpush1.bf16.msra.mxu0 %v2997_v7  ;;  %v3677_v7 = vld [vmem:[%s5042_s4 + $0x98] sm:$0xff]  }
 0xd83   :  { %2408 = vmatprep.subr.bf16.mxu0 %v2994_v54  ;;  %v3679_v54 = vld [vmem:[%s5042_s4 + $0xd0] sm:$0xff]  }
 0xd86   :  { %2409 = vmatpush1.bf16.msra.mxu0 %v2993_v48  ;;  %v3685_v48 = vld [vmem:[%s5042_s4 + $0x88] sm:$0xff]  }
 0xd87   :  { %2410 = vmatprep.subr.bf16.mxu0 %v2990_v41  ;;  %v3687_v41 = vld [vmem:[%s5042_s4 + $0xc0] sm:$0xff]  }
 0xdfb   :  { %v2146_v27 = vpop.xlane.xlu0 %2145 }
 0xdfc   :  { %v2150_v2 = vmul.f32 0.0078125, %v2146_v27  ;;  %v2989_v27 = vcombine.low %v2189_v12, %v2191_v6  ;;  %v3681_v12 = vld [vmem:[%s5042_s4 + $0x90] sm:$0xff]   ;;  %v3682_v6 = vld [vmem:[%s5042_s4 + $0x48] sm:$0xff]  }
 0xdfe   :  { %v4806_v14 = vsub.f32 %v2143_v53, %v2150_v2  ;;  %v2996_v53 = vcombine.high %v2194_v13, %v2196_v25  ;;  %2411 = vmatpush1.bf16.msra.mxu0 %v2989_v27  ;;  %v3675_v13 = vld [vmem:[%s5042_s4 + $0xd8] sm:$0xff]  }
 0xdff   :  { %v2148_v20 = vpop.xlane.xlu1 %2147  ;;  %v3676_v25 = vld [vmem:[%s5042_s4 + $0x18] sm:$0xff]  }
 0xe00   :  { %v2151_v56 = vmul.f32 0.0078125, %v2148_v20  ;;  %v2154_v18 = vmul.f32 %v4806_v14, %v4806_v14  ;;  %2451 = vmatprep.subr.bf16.mxu1 %v2996_v53  ;;  %v2986_v20 = vcombine.high %v2185_v0, %v2187_v34  ;;  %v3680_v53 = vld [vmem:[%s5042_s4 + $0x10] sm:$0xff]  }
 0xe01   :  { %2452 = vmatpush1.bf16.msra.mxu1 %v2995_v23  ;;  %v3686_v23 = vld [vmem:[%s5042_s4 + $0x40] sm:$0xff]  }
 0xe02   :  { %v4810_v62 = vsub.f32 %v2144_v57, %v2151_v56  ;;  %2156 = vadd.xlane.f32.xlu0 %v2154_v18  ;;  %v2192_v57 = vld [vmem:[%s5041_s3 + $0x78] sm:$0xff]  ;;  %v2988_v56 = vcombine.high %v2186_v45, %v2188_v49  ;;  %v2985_v18 = vcombine.low %v2185_v0, %v2187_v34  ;;  %2412 = vmatprep.subr.bf16.mxu0 %v2986_v20  ;;  %v3689_v0 = vld [vmem:[%s5042_s4 + $0x80] sm:$0xff]   ;;  %v2232_v34 = vsub.s32 3, %v3992_v16 }
 0xe03   :  { %v2992_v33 = vcombine.high %v2190_v9, %v2192_v57  ;;  %v2991_v2 = vcombine.low %v2190_v9, %v2192_v57  ;;  %v3683_v9 = vld [vmem:[%s5042_s4 + $0xc8] sm:$0xff]  }
 0xe04   :  { %v2155_v29 = vmul.f32 %v4810_v62, %v4810_v62  ;;  %2413 = vmatpush1.bf16.msra.mxu0 %v2985_v18  ;;  %v3684_v57 = vld [vmem:[%s5042_s4 + $0x8] sm:$0xff]  }
 0xe05   :  { %2453 = vmatprep.subr.bf16.mxu1 %v2992_v33  ;;  %3217 = vmatprep.subr.bf16.mxu0 %v3658_v52  ;;  %v3688_v33 = vld [vmem:[%s5042_s4] sm:$0xff]  }
 0xe06   :  { %2158 = vadd.xlane.f32.xlu0 %v2155_v29  ;;  %2454 = vmatpush1.bf16.msra.mxu1 %v2991_v2  ;;  %v2987_v29 = vcombine.low %v2186_v45, %v2188_v49  ;;  %v2228_v45 = vsub.s32 2, %v3992_v16  ;;  %v67_v49 = vld [vmem:[%s5043_s5 + $0x4] sm:$0xf] }
 0xe07   :  { %2455 = vmatprep.subr.bf16.mxu1 %v2988_v56  ;;  %v2225_v20 = vrot.slane %v67_v49, %v207_v28  ;;  %v2233_v56 = vrot.slane %v67_v49, %v2232_v34  ;;  %v2221_v18 = vrot.slane %v67_v49, %v203_v17 }
 0xe0a   :  { %2456 = vmatpush1.bf16.msra.mxu1 %v2987_v29  ;;  %v2229_v29 = vrot.slane %v67_v49, %v2228_v45 }
 0xe0b   :  { %3239 = vmatprep.subr.bf16.mxu1 %v3659_v47 }
 0xe8b   :  { %v2157_v42 = vpop.xlane.xlu0 %2156 }
 0xe8c   :  { %v2160_v1 = vmul.f32 0.0078125, %v2157_v42 }
 0xe8e   :  { %v2162_v22 = vadd.f32 1e-05, %v2160_v1 }
 0xe8f   :  { %v2159_v3 = vpop.xlane.xlu0 %2158 }
 0xe90   :  { %3722 = vrsqrt.f32 %v2162_v22  ;;  %v2161_v10 = vmul.f32 0.0078125, %v2159_v3 }
 0xe92   :  { %v2163_v24 = vadd.f32 1e-05, %v2161_v10 }
 0xe94   :  { %3724 = vrsqrt.f32 %v2163_v24 }
 0xe9d   :  { %v3723_v40 = vpop.eup %3722 }
 0xe9e   :  { %v2166_v61 = vmul.f32 %v3723_v40, %v4806_v14  ;;  %v3660_v14 = vld [vmem:[%s5042_s4 + $0x38] sm:$0xff]  }
 0xea0   :  { %v2174_v50 = vmul.f32 %v2983_v32, %v2166_v61 }
 0xea1   :  { %v3725_v8 = vpop.eup %3724 }
 0xea2   :  { %v2167_v44 = vmul.f32 %v3725_v8, %v4810_v62  ;;  %v4912_v63 = vadd.f32 %v2984_v46, %v2174_v50 }
 0xea4   :  { %v2175_v21 = vmul.f32 %v2983_v32, %v2167_v44 }
 0xea6   :  { %v4914_v38 = vadd.f32 %v2984_v46, %v2175_v21 }
 0xea8   :  { %v2184_v62 = vpack.c.bf16 %v4914_v38, %v4912_v63 }
 0xeaa   :  { %2431 = vmatmul.mubr.bf16.vlgmr.msra.gmra.mxu0 %v2184_v62  ;;  %2474 = vmatmul.mubr.bf16.vlgmr.msra.gmra.mxu1 %v2184_v62 }
 0xeab   :  { %3218 = vmatpush3.bf16.msra.mxu0 %v3660_v14  ;;  %3240 = vmatpush3.bf16.msra.mxu1 %v3661_v19 }
 0xeac   :  { %3219 = vmatprep.subr.bf16.mxu0 %v3662_v39  ;;  %3241 = vmatprep.subr.bf16.mxu1 %v3663_v58 }
 0xeaf   :  { %3220 = vmatpush3.bf16.msra.mxu0 %v3664_v5  ;;  %3242 = vmatpush3.bf16.msra.mxu1 %v3665_v36 }
 0xeb0   :  { %3221 = vmatprep.subr.bf16.mxu0 %v3666_v11  ;;  %3243 = vmatprep.subr.bf16.mxu1 %v3667_v26 }
 0xeb3   :  { %3222 = vmatpush3.bf16.msra.mxu0 %v3668_v35  ;;  %3244 = vmatpush3.bf16.msra.mxu1 %v3669_v60  ;;  %v3017_v60 = vld [vmem:[%s5043_s5 + $0x8] ss:$0 sm:$0xff] }
 0xeb4   :  { %3223 = vmatprep.subr.bf16.mxu0 %v3670_v59  ;;  %3245 = vmatprep.subr.bf16.mxu1 %v3671_v55 }
 0xeb7   :  { %3224 = vmatpush3.bf16.msra.mxu0 %v3672_v37  ;;  %3246 = vmatpush3.bf16.msra.mxu1 %v3673_v30 }
 0xeb8   :  { %3225 = vmatprep.subr.bf16.mxu0 %v3674_v43  ;;  %3247 = vmatprep.subr.bf16.mxu1 %v3675_v13 }
 0xebb   :  { %3226 = vmatpush3.bf16.msra.mxu0 %v3676_v25  ;;  %3248 = vmatpush3.bf16.msra.mxu1 %v3677_v7 }
 0xebc   :  { %3227 = vmatprep.subr.bf16.mxu0 %v3678_v31  ;;  %3249 = vmatprep.subr.bf16.mxu1 %v3679_v54 }
 0xebf   :  { %3228 = vmatpush3.bf16.msra.mxu0 %v3680_v53  ;;  %3250 = vmatpush3.bf16.msra.mxu1 %v3681_v12 }
 0xec0   :  { %3229 = vmatprep.subr.bf16.mxu0 %v3682_v6  ;;  %3251 = vmatprep.subr.bf16.mxu1 %v3683_v9 }
 0xec3   :  { %3230 = vmatpush3.bf16.msra.mxu0 %v3684_v57  ;;  %3252 = vmatpush3.bf16.msra.mxu1 %v3685_v48 }
 0xec4   :  { %3231 = vmatprep.subr.bf16.mxu0 %v3686_v23  ;;  %3253 = vmatprep.subr.bf16.mxu1 %v3687_v41  ;;  %v2127_v23 = vmul.f32 0.25, %v4776_v51 }
 0xec6   :  { %v2129_v41 = vadd.f32 1e-08, %v2127_v23 }
 0xec7   :  { %3232 = vmatpush3.bf16.msra.mxu0 %v3688_v33  ;;  %3254 = vmatpush3.bf16.msra.mxu1 %v3689_v0  ;;  %v2128_v33 = vmul.f32 0.25, %v4724_v4 }
 0xec8   :  { %3726 = vlog2.f32 %v2129_v41 }
 0xec9   :  { %v2130_v0 = vadd.f32 1e-08, %v2128_v33 }
 0xecb   :  { %3728 = vlog2.f32 %v2130_v0 }
 0xed5   :  { %v3727_v49 = vpop.eup %3726 }
 0xf6a   :  { %v2432_v27 = vpop.f32.mrf.mxu0  ;;  %v2475_v2 = vpop.f32.mrf.mxu1 }
 0xf6b   :  { %v2433_v40 = vadd.f32 %v2432_v27, %v2221_v18  ;;  %v2476_v61 = vadd.f32 %v2475_v2, %v2229_v29 }
 0xf6c   :  { %v2434_v52 = vpop.f32.mrf.mxu0  ;;  %v2477_v47 = vpop.f32.mrf.mxu1 }
 0xf6d   :  { %v2435_v22 = vadd.f32 %v2434_v52, %v2225_v20  ;;  %v2478_v3 = vadd.f32 %v2477_v47, %v2233_v56  ;;  %v2484_v62 = vmax.f32 %v2433_v40, 0.0  ;;  %v2486_v39 = vmax.f32 %v2476_v61, 0.0 }
 0xf6e   :  { %v2436_v42 = vpop.f32.mrf.mxu0  ;;  %v2479_v1 = vpop.f32.mrf.mxu1 }
 0xf6f   :  { %v2437_v10 = vadd.f32 %v2436_v42, %v2221_v18  ;;  %v2480_v24 = vadd.f32 %v2479_v1, %v2229_v29  ;;  %v2485_v21 = vmax.f32 %v2435_v22, 0.0  ;;  %v2487_v14 = vmax.f32 %v2478_v3, 0.0  ;;  %v3729_v18 = vpop.eup %3728 }
 0xf70   :  { %v2438_v32 = vpop.f32.mrf.mxu0  ;;  %v2481_v8 = vpop.f32.mrf.mxu1  ;;  %v2134_v51 = vmul.f32 0.6931472, %v3729_v18  ;;  %v2885_v22 = vand.u32 127, %v201_v15 }
 0xf71   :  { %v2439_v44 = vadd.f32 %v2438_v32, %v2225_v20  ;;  %v2482_v50 = vadd.f32 %v2481_v8, %v2233_v56  ;;  %v2488_v28 = vmax.f32 %v2437_v10, 0.0  ;;  %v2490_v46 = vmax.f32 %v2480_v24, 0.0 }
 0xf72   :  { %v2132_v56 = vmul.f32 0.6931472, %v3727_v49  ;;  %v2136_v4 = vmul.f32 %v2134_v51, %v2128_v33  ;;  %v2888_v61 = vsub.s32 %v2885_v22, %v3992_v16  ;;  %v3051_v16 = vld [vmem:[%s5043_s5 + $0xc] ss:$0 sm:$0xff] }
 0xf73   :  { %v2489_v17 = vmax.f32 %v2439_v44, 0.0  ;;  %v2491_v19 = vmax.f32 %v2482_v50, 0.0  ;;  %v2492_v36 = vpack.c.bf16 %v2488_v28, %v2484_v62  ;;  %v2494_v11 = vpack.c.bf16 %v2490_v46, %v2486_v39 }
 0xf74   :  { %v2135_v52 = vmul.f32 %v2132_v56, %v2127_v23 }
 0xf75   :  { %v2493_v58 = vpack.c.bf16 %v2489_v17, %v2485_v21  ;;  %v2495_v5 = vpack.c.bf16 %v2491_v19, %v2487_v14  ;;  %v3050_v21 = vld [vmem:[%s5043_s5 + $0xb] ss:$0 sm:$0xff] }
 0xf77   :  { %2790 = vmatprep.mubr.bf16.mxu0 %v2493_v58  ;;  %2831 = vmatprep.mubr.bf16.mxu1 %v2495_v5 }
 0xf78   :  { %2791 = vmatmul.mubr.bf16.vlgmr.msra.gmra.mxu0 %v2492_v36  ;;  %2832 = vmatmul.mubr.bf16.vlgmr.msra.gmra.mxu1 %v2494_v11 }
0x1038   :  { %v3233_v26 = vpop.f32.mrf.mxu0  ;;  %v3255_v35 = vpop.f32.mrf.mxu1 }
0x103a   :  { %v3234_v59 = vpop.f32.mrf.mxu0  ;;  %v3256_v55 = vpop.f32.mrf.mxu1 }
0x103b   :  { %v3235_v37 = vadd.f32 %v3234_v59, %v3233_v26  ;;  %v3257_v25 = vadd.f32 %v3256_v55, %v3255_v35 }
0x103c   :  { %v3236_v30 = vpop.f32.mrf.mxu0  ;;  %v3258_v43 = vpop.f32.mrf.mxu1 }
0x103d   :  { %v2793_v13 = vadd.f32 %v3235_v37, %v3017_v60 }
0x103e   :  { %v3237_v7 = vpop.f32.mrf.mxu0  ;;  %v3259_v31 = vpop.f32.mrf.mxu1 }
0x103f   :  { %v2834_v54 = vadd.f32 %v3257_v25, %v2793_v13  ;;  %v3238_v53 = vadd.f32 %v3237_v7, %v3236_v30  ;;  %v3260_v6 = vadd.f32 %v3259_v31, %v3258_v43 }
0x1041   :  { %v2796_v12 = vadd.f32 %v3238_v53, %v3017_v60  ;;  %v2840_v9 = vadd.f32 %v2834_v54, %v4912_v63 }
0x1043   :  { %v2837_v57 = vadd.f32 %v3260_v6, %v2796_v12  ;;  %2842 = vadd.xlane.f32.xlu0 %v2840_v9 }
0x1045   :  { %v2841_v48 = vadd.f32 %v2837_v57, %v4914_v38 }
0x1047   :  { %2844 = vadd.xlane.f32.xlu1 %v2841_v48 }
0x10cc   :  { %v2843_v34 = vpop.xlane.xlu0 %2842 }
0x10cd   :  { %v2846_v45 = vmul.f32 0.0078125, %v2843_v34 }
0x10cf   :  { %v2848_v27 = vsub.f32 %v2840_v9, %v2846_v45 }
0x10d0   :  { %v2845_v2 = vpop.xlane.xlu1 %2844 }
0x10d1   :  { %v2847_v20 = vmul.f32 0.0078125, %v2845_v2  ;;  %v2850_v63 = vmul.f32 %v2848_v27, %v2848_v27 }
0x10d3   :  { %v2849_v29 = vsub.f32 %v2841_v48, %v2847_v20  ;;  %2852 = vadd.xlane.f32.xlu0 %v2850_v63 }
0x10d5   :  { %v2851_v38 = vmul.f32 %v2849_v29, %v2849_v29 }
0x10d7   :  { %2854 = vadd.xlane.f32.xlu1 %v2851_v38  ;;  %2137 = vadd.xlane.f32.xlu0 %v2135_v52 }
0x10db   :  { %2139 = vadd.xlane.f32.xlu1 %v2136_v4 }
0x115c   :  { %v2853_v47 = vpop.xlane.xlu0 %2852 }
0x115d   :  { %v2856_v42 = vmul.f32 0.0078125, %v2853_v47 }
0x115f   :  { %v2858_v1 = vadd.f32 1e-05, %v2856_v42 }
0x1160   :  { %v2855_v3 = vpop.xlane.xlu1 %2854  ;;  %v2138_v10 = vpop.xlane.xlu0 %2137 }
0x1161   :  { %3730 = vrsqrt.f32 %v2858_v1  ;;  %v2857_v24 = vmul.f32 0.0078125, %v2855_v3  ;;  %v2141_v32 = vsub.f32 0.0, %v2138_v10 }
0x1163   :  { %v2859_v40 = vadd.f32 1e-05, %v2857_v24  ;;  %v2889_v50 = vrot.slane %v2141_v32, %v2888_v61 }
0x1164   :  { %v2140_v8 = vpop.xlane.xlu1 %2139 }
0x1165   :  { %3732 = vrsqrt.f32 %v2859_v40  ;;  %v2142_v44 = vsub.f32 0.0, %v2140_v8 }
0x1167   :  { %v2893_v28 = vrot.slane %v2142_v44, %v2888_v61 }
0x1169   :  { %v2895_v46 = vsel %vm2894_vm2, %v2893_v28, %v2889_v50 }
0x116a   :  { %2898 = vst.msk [vmem:[%s5045_s7] sm:$0x3] %vm2897_vm3, %v2895_v46  ;;  %s3738_s7 = scalar_lea.vmem %s2905_s20, 256 }
0x116b   :  { %p3739_p0 = scmp.ne.s32.totalorder %s2905_s20, %s3738_s7  ;;  %p3744_p2 = scmp.lt.s32.totalorder %s3738_s7, %s3738_s7 }
0x116d   :  { %p3745_p3 = por %p3744_p2, %p3743_p1 }
0x116e   :  { %v3731_v15 = vpop.eup %3730 }
0x116f   :  { %v2862_v14 = vmul.f32 %v3731_v15, %v2848_v27  ;;  %p3746_p4 = pnand %p3745_p3, %p3739_p0 }
0x1171   :  { %v2870_v17 = vmul.f32 %v3050_v21, %v2862_v14 }
0x1172   :  { %v3733_v19 = vpop.eup %3732 }
0x1173   :  { %v2863_v62 = vmul.f32 %v3733_v19, %v2849_v29  ;;  %v2878_v39 = vadd.f32 %v3051_v16, %v2870_v17 }
0x1175   :  { %v2871_v58 = vmul.f32 %v3050_v21, %v2863_v62  ;;  %2880 = vst [vmem:[#allocation2] sm:$0xff] %v2878_v39 }
0x1177   :  { %v2879_v5 = vadd.f32 %v3051_v16, %v2871_v58 }
0x1179   :  { %2881 = vst [vmem:[#allocation2 + $0x8] sm:$0xff] %v2879_v5 }
0x117a   :  { %3749 = shalt.err (!%p3746_p4)
}
0x117b   :  { %s3767_s21 = smov 128   ;;  %s3768_s5 = smov 8  }
0x117c   :  { %2910 = dma.vmem_to_hbm [thread:$0]  %s2905_s20, 256, %s5044_s6, [#allocation3], %s3767_s21, %s3767_s21, %s3768_s5  }
0x117d   :  { %3758 = dma.done.wait [#allocation3], 256  }
0x117e   :  { %3759 = vsyncadd [#allocation3], 4294967040 }
0x117f   :  { %2918 = vsyncpa [#allocation3], 1 }

</bundles_post_ra>
